<compile_context>
chip_gen: v6e
topology: v6e:2x2x1
jax: 0.10.0
libtpu: 0.0.40
codegen_flags: <defaults>
</compile_context>

<pallas_src>
import functools

import numpy as np
import jax
import jax.numpy as jnp
from jax.experimental import pallas as pl
from jax.experimental.pallas import tpu as pltpu

NEG_SLOPE = 0.2


def _leaky(v):
    return jnp.where(v >= 0, v, NEG_SLOPE * v)


# ----------------------------------------------------------------------------
# Pallas kernel: B_blk batch elements per grid step, 10 MXU matmuls, no scratch.
# ----------------------------------------------------------------------------
def _fourier_transform_kernel(
    x_ref,      # (BC, HW)   input slab, rows = (batch, channel)
    bd1_ref,    # (M1, BC)   kron(I_Bblk, conv1.weight)           [param_dtype]
    b1_ref,     # (M1, 1)    conv1 bias                           [f32]
    cosT_ref,   # (HW, P)    forward DFT real operator  cos^T     [param_dtype]
    nsinT_ref,  # (HW, P)    forward DFT imag operator -sin^T     [param_dtype]
    wrr_ref,    # (M1, M1)   FourierUnit conv re<-re (block-diag) [param_dtype]
    wri_ref,    # (M1, M1)   FourierUnit conv re<-im
    wir_ref,    # (M1, M1)   FourierUnit conv im<-re
    wii_ref,    # (M1, M1)   FourierUnit conv im<-im
    bre_ref,    # (M1, 1)    FourierUnit bias (real channels)     [f32]
    bim_ref,    # (M1, 1)    FourierUnit bias (imag channels)     [f32]
    nrT_ref,    # (P, HW)    inverse DFT operator  Nr^T           [param_dtype]
    nniT_ref,   # (P, HW)    inverse DFT operator -Ni^T           [param_dtype]
    bd2_ref,    # (BC, M1)   kron(I_Bblk, conv2.weight)           [param_dtype]
    b2_ref,     # (BC, 1)    conv2 bias                           [f32]
    out_ref,    # (BC, HW)
):
    wdt = bd1_ref.dtype   # matmul operand dtype (bf16 or f32); accumulation is f32
    f32 = jnp.float32

    x = x_ref[...].astype(wdt)

    # conv1 (1x1) for all B_blk elements as one block-diagonal matmul + LeakyReLU(0.2)
    y = _leaky(jnp.dot(bd1_ref[...], x, preferred_element_type=f32) + b1_ref[...])
    yw = y.astype(wdt)

    # rfft2 (ortho): two dense-DFT matmuls -> real / imag spectra kept as f32
    # values (no [Re | Im] restack, no VMEM scratch).
    re = jnp.dot(yw, cosT_ref[...], preferred_element_type=f32)     # (M1, P)
    im = jnp.dot(yw, nsinT_ref[...], preferred_element_type=f32)    # (M1, P)
    rew, imw = re.astype(wdt), im.astype(wdt)

    # FourierUnit 1x1 conv over interleaved (re, im) channels + LeakyReLU(0.2),
    # de-interleaved into four block-diagonal matmuls (no [Re ; Im] restack).
    zre = _leaky(jnp.dot(wrr_ref[...], rew, preferred_element_type=f32)
                 + jnp.dot(wri_ref[...], imw, preferred_element_type=f32)
                 + bre_ref[...])
    zim = _leaky(jnp.dot(wir_ref[...], rew, preferred_element_type=f32)
                 + jnp.dot(wii_ref[...], imw, preferred_element_type=f32)
                 + bim_ref[...])
    # NOTE: padded lanes [HWf, P) of zre/zim hold leaky(bias); rows [HWf, P) of
    # nrT / nniT are zero, which annihilates them in the inverse DFT below.

    # irfft2 (ortho): two dense inverse-DFT matmuls
    fu = (jnp.dot(zre.astype(wdt), nrT_ref[...], preferred_element_type=f32)
          + jnp.dot(zim.astype(wdt), nniT_ref[...], preferred_element_type=f32))

    # residual add + conv2 (1x1) as one block-diagonal matmul
    out = (jnp.dot(bd2_ref[...], (y + fu).astype(wdt), preferred_element_type=f32)
           + b2_ref[...])
    out_ref[...] = out.astype(out_ref.dtype)


# ----------------------------------------------------------------------------
# Host-side constants (cached): split / padded DFT bases.
# ----------------------------------------------------------------------------
@functools.lru_cache(maxsize=None)
def _dft_bases_np(H, W, P):
    """Dense DFT operators matching torch.fft.rfftn / irfftn (norm='ortho'),
    split into (cos^T, -sin^T) forward and (Nr^T, -Ni^T) inverse operands and
    zero-padded along the frequency axis to P lanes."""
    Wf = W // 2 + 1
    HW, HWf = H * W, H * Wf
    scale = 1.0 / np.sqrt(H * W)
    h = np.arange(H)
    w = np.arange(W)
    k = np.arange(Wf)

    ph_hh = np.outer(h, h) / H                       # symmetric in (k1, h)
    ph_kw = np.outer(k, w) / W                       # (Wf, W)
    theta_f = 2.0 * np.pi * (ph_hh[:, None, :, None] + ph_kw[None, :, None, :])
    Mc = (np.cos(theta_f) * scale).reshape(HWf, HW)  # rows (k1,k2), cols (h,w)
    Ms = (np.sin(theta_f) * scale).reshape(HWf, HW)

    alpha = np.full(Wf, 2.0)                         # hermitian double-count weights
    alpha[0] = 1.0
    if W % 2 == 0:
        alpha[-1] = 1.0
    ph_wk = np.outer(w, k) / W                       # (W, Wf)
    theta_i = 2.0 * np.pi * (ph_hh[:, None, :, None] + ph_wk[None, :, None, :])
    Nr = (alpha[None, None, None, :] * np.cos(theta_i) * scale).reshape(HW, HWf)
    Ni = (alpha[None, None, None, :] * np.sin(theta_i) * scale).reshape(HW, HWf)

    cosT = np.zeros((HW, P), np.float32)
    cosT[:, :HWf] = Mc.T
    nsinT = np.zeros((HW, P), np.float32)
    nsinT[:, :HWf] = -Ms.T
    nrT = np.zeros((P, HW), np.float32)              # rows [HWf:P] stay zero (see NOTE)
    nrT[:HWf, :] = Nr.T
    nniT = np.zeros((P, HW), np.float32)
    nniT[:HWf, :] = -Ni.T
    return cosT, nsinT, nrT, nniT


# ----------------------------------------------------------------------------
# Generation-aware batch-blocking policy.
# ----------------------------------------------------------------------------
def _grid_policy():
    """(target M1 rows per grid step, preferred min grid steps) per TPU gen."""
    try:
        kind = jax.devices()[0].device_kind.lower()
    except Exception:
        return 128, 1
    if "v7" in kind or "tpu7" in kind:
        return 64, 4       # 2 TensorCores: want >= 2 pipelined steps per core
    if "v6" in kind or "tpu6" in kind:
        return 256, 1      # single TC, 256x256 MXU: fewer, fatter steps
    return 128, 1          # v5e (128x128 MXU) and default


def _pick_batch_block(B, C2, target_rows, min_steps):
    """Batch elements per grid step: divisor d of B with d*2*C2 rows a multiple
    of 8 (block constraint), M1 = d*C2 <= target_rows, preferring >= min_steps
    grid steps."""
    C = 2 * C2
    cands = [d for d in range(1, B + 1) if B % d == 0 and (d * C) % 8 == 0]
    if not cands:
        return B                                     # full-array block is always legal
    fitting = [d for d in cands if d * C2 <= target_rows] or [min(cands)]
    multi = [d for d in fitting if B // d >= min_steps]
    return max(multi) if multi else max(fitting)


# ----------------------------------------------------------------------------
# Builder: constants precomputed once per parameter set, returns a jitted fn.
# ----------------------------------------------------------------------------
def make_fourier_transform(w1, b1, wf, bf, w2, b2, *, batch, height, width,
                           param_dtype=jnp.bfloat16):
    """Returns a jitted x (NCHW f32) -> y (NCHW f32) callable implementing
    FourierTransform (last_conv=False)."""
    C2 = w1.shape[0]
    C = 2 * C2
    B, H, W = batch, height, width
    HW = H * W
    HWf = H * (W // 2 + 1)
    P = max(128, -(-HWf // 128) * 128)               # lane-dense frequency width

    target_rows, min_steps = _grid_policy()
    B_blk = _pick_batch_block(B, C2, target_rows, min_steps)
    assert (B_blk * C) % 8 == 0 or B_blk == B, (
        "row block must be a multiple of 8 or span the full batch*channel axis")
    n_steps = B // B_blk
    M1 = B_blk * C2                                  # MXU M for DFT / FourierUnit matmuls
    BC = B_blk * C

    npf32 = np.float32
    w1n = np.asarray(w1, npf32).reshape(C2, C)
    wfn = np.asarray(wf, npf32).reshape(C, C)
    w2n = np.asarray(w2, npf32).reshape(C, C2)

    eye = np.eye(B_blk, dtype=npf32)
    bd1 = np.kron(eye, w1n)                                                 # (M1, BC)
    bd2 = np.kron(eye, w2n)                                                 # (BC, M1)
    # De-interleave FourierUnit conv: channel 2i = real(i), channel 2i+1 = imag(i).
    wrr = np.kron(eye, wfn[0::2, 0::2])
    wri = np.kron(eye, wfn[0::2, 1::2])
    wir = np.kron(eye, wfn[1::2, 0::2])
    wii = np.kron(eye, wfn[1::2, 1::2])

    b1c = np.tile(np.asarray(b1, npf32).reshape(-1), B_blk)[:, None]        # (M1, 1)
    bre = np.tile(np.asarray(bf, npf32).reshape(-1)[0::2], B_blk)[:, None]  # (M1, 1)
    bim = np.tile(np.asarray(bf, npf32).reshape(-1)[1::2], B_blk)[:, None]  # (M1, 1)
    b2c = np.tile(np.asarray(b2, npf32).reshape(-1), B_blk)[:, None]        # (BC, 1)

    cosT, nsinT, nrT, nniT = _dft_bases_np(H, W, P)

    pd = param_dtype
    consts = (
        jnp.asarray(bd1, pd), jnp.asarray(b1c, jnp.float32),
        jnp.asarray(cosT, pd), jnp.asarray(nsinT, pd),
        jnp.asarray(wrr, pd), jnp.asarray(wri, pd),
        jnp.asarray(wir, pd), jnp.asarray(wii, pd),
        jnp.asarray(bre, jnp.float32), jnp.asarray(bim, jnp.float32),
        jnp.asarray(nrT, pd), jnp.asarray(nniT, pd),
        jnp.asarray(bd2, pd), jnp.asarray(b2c, jnp.float32),
    )
    const_shapes = [
        (M1, BC), (M1, 1),
        (HW, P), (HW, P),
        (M1, M1), (M1, M1), (M1, M1), (M1, M1),
        (M1, 1), (M1, 1),
        (P, HW), (P, HW),
        (BC, M1), (BC, 1),
    ]

    def build(single_buffer_consts):
        def const_spec(shape):
            if single_buffer_consts:
                # Constant block index -> fetched once; a single VMEM buffer
                # halves their footprint (matters on v7x's 64 MiB VMEM).
                return pl.BlockSpec(shape, lambda i: (0, 0),
                                    pipeline_mode=pl.Buffered(1))
            return pl.BlockSpec(shape, lambda i: (0, 0))

        call = pl.pallas_call(
            _fourier_transform_kernel,
            out_shape=jax.ShapeDtypeStruct((B * C, HW), jnp.float32),
            grid=(n_steps,),
            in_specs=[pl.BlockSpec((BC, HW), lambda i: (i, 0))]     # x slab / step
                     + [const_spec(s) for s in const_shapes],
            out_specs=pl.BlockSpec((BC, HW), lambda i: (i, 0)),
            compiler_params=pltpu.CompilerParams(
                dimension_semantics=("parallel",),   # shard batch blocks over v7x TCs
                vmem_limit_bytes=32 * 1024 * 1024,   # plenty at these sizes, v7x-safe
            ),
        )

        def apply(x):
            # bf16 x slab halves the HBM read on the production path.
            x2d = x.reshape(B * C, HW).astype(param_dtype)
            return call(x2d, *consts).reshape(B, C, H, W)

        return jax.jit(apply)

    try:
        fn = build(True)
        # Probe compile+run; falls back if this JAX rejects BlockSpec.pipeline_mode
        # / Buffered(1).  The compiled executable is reused by later calls.
        jax.block_until_ready(fn(jnp.zeros((B, C, H, W), jnp.float32)))
    except Exception:
        fn = build(False)
    return fn


# ----------------------------------------------------------------------------
# Pure-JAX reference (jnp.fft) for correctness checking.
# ----------------------------------------------------------------------------
def _conv1x1(x, w, b):
    return (jnp.einsum("oc,bchw->bohw", w, x, precision=jax.lax.Precision.HIGHEST)
            + b.reshape(-1)[None, :, None, None])


def fourier_transform_reference(x, w1, b1, wf, bf, w2, b2):
    B, C, H, W = x.shape
    C2 = w1.shape[0]
    Wf = W // 2 + 1
    y = _leaky(_conv1x1(x, w1, b1))
    ff = jnp.fft.rfft2(y, norm="ortho")
    st = jnp.stack([ff.real, ff.imag], axis=2).reshape(B, 2 * C2, H, Wf)
    z = _leaky(_conv1x1(st, wf, bf))
    z = z.reshape(B, C2, 2, H, Wf)
    fu = jnp.fft.irfft2(z[:, :, 0] + 1j * z[:, :, 1], s=(H, W), norm="ortho")
    return _conv1x1(y + fu, w2, b2)


# ----------------------------------------------------------------------------
if __name__ == "__main__":
    B, EMBED, H, W = 2, 8, 16, 16                   # small demo shapes
    C, C2 = EMBED, EMBED // 2

    key = jax.random.PRNGKey(0)
    ks = jax.random.split(key, 7)

    def init_u(k, shape, fan_in):
        bound = 1.0 / np.sqrt(fan_in)
        return jax.random.uniform(k, shape, jnp.float32, -bound, bound)

    # Parameter shapes follow the PyTorch module's __init__ (1x1 convs + biases).
    w1 = init_u(ks[0], (C2, C), C)                  # conv1 weight
    b1 = init_u(ks[1], (C2,), C)                    # conv1 bias
    wf = init_u(ks[2], (2 * C2, 2 * C2), 2 * C2)    # FourierUnit conv weight
    bf = init_u(ks[3], (2 * C2,), 2 * C2)           # FourierUnit conv bias
    w2 = init_u(ks[4], (C, C2), C2)                 # conv2 weight
    b2 = init_u(ks[5], (C,), C2)                    # conv2 bias
    x = jax.random.normal(ks[6], (B, C, H, W), jnp.float32)

    ref = jax.block_until_ready(fourier_transform_reference(x, w1, b1, wf, bf, w2, b2))

    # Exact float32-operand path.
    ft_f32 = make_fourier_transform(w1, b1, wf, bf, w2, b2, batch=B, height=H,
                                    width=W, param_dtype=jnp.float32)
    out = jax.block_until_ready(ft_f32(x))
    np.testing.assert_allclose(np.asarray(out), np.asarray(ref), rtol=1e-2, atol=1e-2)

    # Production default: bf16 matmul operands (weights, DFT bases, x slab),
    # f32 accumulation / bias / LeakyReLU / residual / output.
    ft_bf16 = make_fourier_transform(w1, b1, wf, bf, w2, b2, batch=B, height=H, width=W)
    out_bf16 = jax.block_until_ready(ft_bf16(x))
    np.testing.assert_allclose(np.asarray(out_bf16), np.asarray(ref), rtol=5e-2, atol=8e-2)

    print("KERNEL_OK")
</pallas_src>

<mosaic_0001>
module attributes {stable_mosaic.version = 11 : i64} {
  func.func @_fourier_transform_kernel(%arg0: i32, %arg1: memref<16x256xf32, #tpu.memory_space<vmem>>, %arg2: memref<8x16xf32, #tpu.memory_space<vmem>>, %arg3: memref<8x1xf32, #tpu.memory_space<vmem>>, %arg4: memref<256x256xf32, #tpu.memory_space<vmem>>, %arg5: memref<256x256xf32, #tpu.memory_space<vmem>>, %arg6: memref<8x8xf32, #tpu.memory_space<vmem>>, %arg7: memref<8x8xf32, #tpu.memory_space<vmem>>, %arg8: memref<8x8xf32, #tpu.memory_space<vmem>>, %arg9: memref<8x8xf32, #tpu.memory_space<vmem>>, %arg10: memref<8x1xf32, #tpu.memory_space<vmem>>, %arg11: memref<8x1xf32, #tpu.memory_space<vmem>>, %arg12: memref<256x256xf32, #tpu.memory_space<vmem>>, %arg13: memref<256x256xf32, #tpu.memory_space<vmem>>, %arg14: memref<16x8xf32, #tpu.memory_space<vmem>>, %arg15: memref<16x1xf32, #tpu.memory_space<vmem>>, %arg16: memref<16x256xf32, #tpu.memory_space<vmem>>) attributes {dimension_semantics = [#tpu.dimension_semantics<parallel>], iteration_bounds = array<i64: 1>, scalar_prefetch = 0 : i64, scratch_operands = 0 : i64, tpu.core_type = #tpu.core_type<tc>, window_params = [{transform_indices = @transform_0, window_bounds = array<i64: 16, 256>}, {pipeline_mode = #tpu.pipeline_mode<synchronous>, transform_indices = @transform_1, window_bounds = array<i64: 8, 16>}, {pipeline_mode = #tpu.pipeline_mode<synchronous>, transform_indices = @transform_2, window_bounds = array<i64: 8, 1>}, {pipeline_mode = #tpu.pipeline_mode<synchronous>, transform_indices = @transform_3, window_bounds = array<i64: 256, 256>}, {pipeline_mode = #tpu.pipeline_mode<synchronous>, transform_indices = @transform_4, window_bounds = array<i64: 256, 256>}, {pipeline_mode = #tpu.pipeline_mode<synchronous>, transform_indices = @transform_5, window_bounds = array<i64: 8, 8>}, {pipeline_mode = #tpu.pipeline_mode<synchronous>, transform_indices = @transform_6, window_bounds = array<i64: 8, 8>}, {pipeline_mode = #tpu.pipeline_mode<synchronous>, transform_indices = @transform_7, window_bounds = array<i64: 8, 8>}, {pipeline_mode = #tpu.pipeline_mode<synchronous>, transform_indices = @transform_8, window_bounds = array<i64: 8, 8>}, {pipeline_mode = #tpu.pipeline_mode<synchronous>, transform_indices = @transform_9, window_bounds = array<i64: 8, 1>}, {pipeline_mode = #tpu.pipeline_mode<synchronous>, transform_indices = @transform_10, window_bounds = array<i64: 8, 1>}, {pipeline_mode = #tpu.pipeline_mode<synchronous>, transform_indices = @transform_11, window_bounds = array<i64: 256, 256>}, {pipeline_mode = #tpu.pipeline_mode<synchronous>, transform_indices = @transform_12, window_bounds = array<i64: 256, 256>}, {pipeline_mode = #tpu.pipeline_mode<synchronous>, transform_indices = @transform_13, window_bounds = array<i64: 16, 8>}, {pipeline_mode = #tpu.pipeline_mode<synchronous>, transform_indices = @transform_14, window_bounds = array<i64: 16, 1>}, {transform_indices = @transform_15, window_bounds = array<i64: 16, 256>}]} {
    %c0 = arith.constant 0 : index
    %c0_0 = arith.constant 0 : index
    %0 = vector.load %arg1[%c0, %c0_0] : memref<16x256xf32, #tpu.memory_space<vmem>>, vector<16x256xf32>
    %c0_1 = arith.constant 0 : index
    %c0_2 = arith.constant 0 : index
    %1 = vector.load %arg2[%c0_1, %c0_2] : memref<8x16xf32, #tpu.memory_space<vmem>>, vector<8x16xf32>
    %cst = arith.constant dense<0.000000e+00> : vector<8x256xf32>
    %2 = tpu.matmul %1, %0, %cst {dimension_numbers = #tpu.dot_dimension_numbers<[1], [0], [0], [1], [0, 0, 1, 1], [], []>} : vector<8x16xf32>, vector<16x256xf32>, vector<8x256xf32> -> vector<8x256xf32>
    %c0_3 = arith.constant 0 : index
    %c0_4 = arith.constant 0 : index
    %3 = vector.load %arg3[%c0_3, %c0_4] : memref<8x1xf32, #tpu.memory_space<vmem>>, vector<8x1xf32>
    %4 = vector.broadcast %3 : vector<8x1xf32> to vector<8x256xf32>
    %5 = arith.addf %2, %4 : vector<8x256xf32>
    %cst_5 = arith.constant 0.000000e+00 : f32
    %6 = vector.broadcast %cst_5 : f32 to vector<8x256xf32>
    %7 = arith.cmpf oge, %5, %6 : vector<8x256xf32>
    %cst_6 = arith.constant 2.000000e-01 : f32
    %8 = vector.broadcast %cst_6 : f32 to vector<8x256xf32>
    %9 = arith.mulf %8, %5 : vector<8x256xf32>
    %10 = arith.select %7, %5, %9 : vector<8x256xi1>, vector<8x256xf32>
    %c0_7 = arith.constant 0 : index
    %c0_8 = arith.constant 0 : index
    %11 = vector.load %arg4[%c0_7, %c0_8] : memref<256x256xf32, #tpu.memory_space<vmem>>, vector<256x256xf32>
    %cst_9 = arith.constant dense<0.000000e+00> : vector<8x256xf32>
    %12 = tpu.matmul %10, %11, %cst_9 {dimension_numbers = #tpu.dot_dimension_numbers<[1], [0], [0], [1], [0, 0, 1, 1], [], []>} : vector<8x256xf32>, vector<256x256xf32>, vector<8x256xf32> -> vector<8x256xf32>
    %c0_10 = arith.constant 0 : index
    %c0_11 = arith.constant 0 : index
    %13 = vector.load %arg5[%c0_10, %c0_11] : memref<256x256xf32, #tpu.memory_space<vmem>>, vector<256x256xf32>
    %cst_12 = arith.constant dense<0.000000e+00> : vector<8x256xf32>
    %14 = tpu.matmul %10, %13, %cst_12 {dimension_numbers = #tpu.dot_dimension_numbers<[1], [0], [0], [1], [0, 0, 1, 1], [], []>} : vector<8x256xf32>, vector<256x256xf32>, vector<8x256xf32> -> vector<8x256xf32>
    %c0_13 = arith.constant 0 : index
    %c0_14 = arith.constant 0 : index
    %15 = vector.load %arg6[%c0_13, %c0_14] : memref<8x8xf32, #tpu.memory_space<vmem>>, vector<8x8xf32>
    %cst_15 = arith.constant dense<0.000000e+00> : vector<8x256xf32>
    %16 = tpu.matmul %15, %12, %cst_15 {dimension_numbers = #tpu.dot_dimension_numbers<[1], [0], [0], [1], [0, 0, 1, 1], [], []>} : vector<8x8xf32>, vector<8x256xf32>, vector<8x256xf32> -> vector<8x256xf32>
    %c0_16 = arith.constant 0 : index
    %c0_17 = arith.constant 0 : index
    %17 = vector.load %arg7[%c0_16, %c0_17] : memref<8x8xf32, #tpu.memory_space<vmem>>, vector<8x8xf32>
    %cst_18 = arith.constant dense<0.000000e+00> : vector<8x256xf32>
    %18 = tpu.matmul %17, %14, %cst_18 {dimension_numbers = #tpu.dot_dimension_numbers<[1], [0], [0], [1], [0, 0, 1, 1], [], []>} : vector<8x8xf32>, vector<8x256xf32>, vector<8x256xf32> -> vector<8x256xf32>
    %19 = arith.addf %16, %18 : vector<8x256xf32>
    %c0_19 = arith.constant 0 : index
    %c0_20 = arith.constant 0 : index
    %20 = vector.load %arg10[%c0_19, %c0_20] : memref<8x1xf32, #tpu.memory_space<vmem>>, vector<8x1xf32>
    %21 = vector.broadcast %20 : vector<8x1xf32> to vector<8x256xf32>
    %22 = arith.addf %19, %21 : vector<8x256xf32>
    %cst_21 = arith.constant 0.000000e+00 : f32
    %23 = vector.broadcast %cst_21 : f32 to vector<8x256xf32>
    %24 = arith.cmpf oge, %22, %23 : vector<8x256xf32>
    %cst_22 = arith.constant 2.000000e-01 : f32
    %25 = vector.broadcast %cst_22 : f32 to vector<8x256xf32>
    %26 = arith.mulf %25, %22 : vector<8x256xf32>
    %27 = arith.select %24, %22, %26 : vector<8x256xi1>, vector<8x256xf32>
    %c0_23 = arith.constant 0 : index
    %c0_24 = arith.constant 0 : index
    %28 = vector.load %arg8[%c0_23, %c0_24] : memref<8x8xf32, #tpu.memory_space<vmem>>, vector<8x8xf32>
    %cst_25 = arith.constant dense<0.000000e+00> : vector<8x256xf32>
    %29 = tpu.matmul %28, %12, %cst_25 {dimension_numbers = #tpu.dot_dimension_numbers<[1], [0], [0], [1], [0, 0, 1, 1], [], []>} : vector<8x8xf32>, vector<8x256xf32>, vector<8x256xf32> -> vector<8x256xf32>
    %c0_26 = arith.constant 0 : index
    %c0_27 = arith.constant 0 : index
    %30 = vector.load %arg9[%c0_26, %c0_27] : memref<8x8xf32, #tpu.memory_space<vmem>>, vector<8x8xf32>
    %cst_28 = arith.constant dense<0.000000e+00> : vector<8x256xf32>
    %31 = tpu.matmul %30, %14, %cst_28 {dimension_numbers = #tpu.dot_dimension_numbers<[1], [0], [0], [1], [0, 0, 1, 1], [], []>} : vector<8x8xf32>, vector<8x256xf32>, vector<8x256xf32> -> vector<8x256xf32>
    %32 = arith.addf %29, %31 : vector<8x256xf32>
    %c0_29 = arith.constant 0 : index
    %c0_30 = arith.constant 0 : index
    %33 = vector.load %arg11[%c0_29, %c0_30] : memref<8x1xf32, #tpu.memory_space<vmem>>, vector<8x1xf32>
    %34 = vector.broadcast %33 : vector<8x1xf32> to vector<8x256xf32>
    %35 = arith.addf %32, %34 : vector<8x256xf32>
    %cst_31 = arith.constant 0.000000e+00 : f32
    %36 = vector.broadcast %cst_31 : f32 to vector<8x256xf32>
    %37 = arith.cmpf oge, %35, %36 : vector<8x256xf32>
    %cst_32 = arith.constant 2.000000e-01 : f32
    %38 = vector.broadcast %cst_32 : f32 to vector<8x256xf32>
    %39 = arith.mulf %38, %35 : vector<8x256xf32>
    %40 = arith.select %37, %35, %39 : vector<8x256xi1>, vector<8x256xf32>
    %c0_33 = arith.constant 0 : index
    %c0_34 = arith.constant 0 : index
    %41 = vector.load %arg12[%c0_33, %c0_34] : memref<256x256xf32, #tpu.memory_space<vmem>>, vector<256x256xf32>
    %cst_35 = arith.constant dense<0.000000e+00> : vector<8x256xf32>
    %42 = tpu.matmul %27, %41, %cst_35 {dimension_numbers = #tpu.dot_dimension_numbers<[1], [0], [0], [1], [0, 0, 1, 1], [], []>} : vector<8x256xf32>, vector<256x256xf32>, vector<8x256xf32> -> vector<8x256xf32>
    %c0_36 = arith.constant 0 : index
    %c0_37 = arith.constant 0 : index
    %43 = vector.load %arg13[%c0_36, %c0_37] : memref<256x256xf32, #tpu.memory_space<vmem>>, vector<256x256xf32>
    %cst_38 = arith.constant dense<0.000000e+00> : vector<8x256xf32>
    %44 = tpu.matmul %40, %43, %cst_38 {dimension_numbers = #tpu.dot_dimension_numbers<[1], [0], [0], [1], [0, 0, 1, 1], [], []>} : vector<8x256xf32>, vector<256x256xf32>, vector<8x256xf32> -> vector<8x256xf32>
    %45 = arith.addf %42, %44 : vector<8x256xf32>
    %c0_39 = arith.constant 0 : index
    %c0_40 = arith.constant 0 : index
    %46 = vector.load %arg14[%c0_39, %c0_40] : memref<16x8xf32, #tpu.memory_space<vmem>>, vector<16x8xf32>
    %47 = arith.addf %10, %45 : vector<8x256xf32>
    %cst_41 = arith.constant dense<0.000000e+00> : vector<16x256xf32>
    %48 = tpu.matmul %46, %47, %cst_41 {dimension_numbers = #tpu.dot_dimension_numbers<[1], [0], [0], [1], [0, 0, 1, 1], [], []>} : vector<16x8xf32>, vector<8x256xf32>, vector<16x256xf32> -> vector<16x256xf32>
    %c0_42 = arith.constant 0 : index
    %c0_43 = arith.constant 0 : index
    %49 = vector.load %arg15[%c0_42, %c0_43] : memref<16x1xf32, #tpu.memory_space<vmem>>, vector<16x1xf32>
    %50 = vector.broadcast %49 : vector<16x1xf32> to vector<16x256xf32>
    %51 = arith.addf %48, %50 : vector<16x256xf32>
    %c0_44 = arith.constant 0 : index
    %c0_45 = arith.constant 0 : index
    %52 = vector.load %arg16[%c0_44, %c0_45] : memref<16x256xf32, #tpu.memory_space<vmem>>, vector<16x256xf32>
    tpu.vector_store %arg16[%c0_44, %c0_45], %51 {strides = array<i32>} : memref<16x256xf32, #tpu.memory_space<vmem>>, vector<16x256xf32>,
    return
  }
  func.func @transform_0(%arg0: i32) -> (i32, i32) {
    %c0_i32 = arith.constant 0 : i32
    %c0_i32_0 = arith.constant 0 : i32
    return %arg0, %c0_i32 : i32, i32
  }
  func.func @transform_1(%arg0: i32) -> (i32, i32) {
    %c0_i32 = arith.constant 0 : i32
    %c0_i32_0 = arith.constant 0 : i32
    %c0_i32_1 = arith.constant 0 : i32
    return %c0_i32, %c0_i32_0 : i32, i32
  }
  func.func @transform_2(%arg0: i32) -> (i32, i32) {
    %c0_i32 = arith.constant 0 : i32
    %c0_i32_0 = arith.constant 0 : i32
    %c0_i32_1 = arith.constant 0 : i32
    return %c0_i32, %c0_i32_0 : i32, i32
  }
  func.func @transform_3(%arg0: i32) -> (i32, i32) {
    %c0_i32 = arith.constant 0 : i32
    %c0_i32_0 = arith.constant 0 : i32
    %c0_i32_1 = arith.constant 0 : i32
    return %c0_i32, %c0_i32_0 : i32, i32
  }
  func.func @transform_4(%arg0: i32) -> (i32, i32) {
    %c0_i32 = arith.constant 0 : i32
    %c0_i32_0 = arith.constant 0 : i32
    %c0_i32_1 = arith.constant 0 : i32
    return %c0_i32, %c0_i32_0 : i32, i32
  }
  func.func @transform_5(%arg0: i32) -> (i32, i32) {
    %c0_i32 = arith.constant 0 : i32
    %c0_i32_0 = arith.constant 0 : i32
    %c0_i32_1 = arith.constant 0 : i32
    return %c0_i32, %c0_i32_0 : i32, i32
  }
  func.func @transform_6(%arg0: i32) -> (i32, i32) {
    %c0_i32 = arith.constant 0 : i32
    %c0_i32_0 = arith.constant 0 : i32
    %c0_i32_1 = arith.constant 0 : i32
    return %c0_i32, %c0_i32_0 : i32, i32
  }
  func.func @transform_7(%arg0: i32) -> (i32, i32) {
    %c0_i32 = arith.constant 0 : i32
    %c0_i32_0 = arith.constant 0 : i32
    %c0_i32_1 = arith.constant 0 : i32
    return %c0_i32, %c0_i32_0 : i32, i32
  }
  func.func @transform_8(%arg0: i32) -> (i32, i32) {
    %c0_i32 = arith.constant 0 : i32
    %c0_i32_0 = arith.constant 0 : i32
    %c0_i32_1 = arith.constant 0 : i32
    return %c0_i32, %c0_i32_0 : i32, i32
  }
  func.func @transform_9(%arg0: i32) -> (i32, i32) {
    %c0_i32 = arith.constant 0 : i32
    %c0_i32_0 = arith.constant 0 : i32
    %c0_i32_1 = arith.constant 0 : i32
    return %c0_i32, %c0_i32_0 : i32, i32
  }
  func.func @transform_10(%arg0: i32) -> (i32, i32) {
    %c0_i32 = arith.constant 0 : i32
    %c0_i32_0 = arith.constant 0 : i32
    %c0_i32_1 = arith.constant 0 : i32
    return %c0_i32, %c0_i32_0 : i32, i32
  }
  func.func @transform_11(%arg0: i32) -> (i32, i32) {
    %c0_i32 = arith.constant 0 : i32
    %c0_i32_0 = arith.constant 0 : i32
    %c0_i32_1 = arith.constant 0 : i32
    return %c0_i32, %c0_i32_0 : i32, i32
  }
  func.func @transform_12(%arg0: i32) -> (i32, i32) {
    %c0_i32 = arith.constant 0 : i32
    %c0_i32_0 = arith.constant 0 : i32
    %c0_i32_1 = arith.constant 0 : i32
    return %c0_i32, %c0_i32_0 : i32, i32
  }
  func.func @transform_13(%arg0: i32) -> (i32, i32) {
    %c0_i32 = arith.constant 0 : i32
    %c0_i32_0 = arith.constant 0 : i32
    %c0_i32_1 = arith.constant 0 : i32
    return %c0_i32, %c0_i32_0 : i32, i32
  }
  func.func @transform_14(%arg0: i32) -> (i32, i32) {
    %c0_i32 = arith.constant 0 : i32
    %c0_i32_0 = arith.constant 0 : i32
    %c0_i32_1 = arith.constant 0 : i32
    return %c0_i32, %c0_i32_0 : i32, i32
  }
  func.func @transform_15(%arg0: i32) -> (i32, i32) {
    %c0_i32 = arith.constant 0 : i32
    %c0_i32_0 = arith.constant 0 : i32
    return %arg0, %c0_i32 : i32, i32
  }
}

module attributes {stable_mosaic.version = 11 : i64} {
  func.func @_fourier_transform_kernel(%arg0: i32, %arg1: memref<16x256xf32, #tpu.memory_space<vmem>>, %arg2: memref<8x16xf32, #tpu.memory_space<vmem>>, %arg3: memref<8x1xf32, #tpu.memory_space<vmem>>, %arg4: memref<256x256xf32, #tpu.memory_space<vmem>>, %arg5: memref<256x256xf32, #tpu.memory_space<vmem>>, %arg6: memref<8x8xf32, #tpu.memory_space<vmem>>, %arg7: memref<8x8xf32, #tpu.memory_space<vmem>>, %arg8: memref<8x8xf32, #tpu.memory_space<vmem>>, %arg9: memref<8x8xf32, #tpu.memory_space<vmem>>, %arg10: memref<8x1xf32, #tpu.memory_space<vmem>>, %arg11: memref<8x1xf32, #tpu.memory_space<vmem>>, %arg12: memref<256x256xf32, #tpu.memory_space<vmem>>, %arg13: memref<256x256xf32, #tpu.memory_space<vmem>>, %arg14: memref<16x8xf32, #tpu.memory_space<vmem>>, %arg15: memref<16x1xf32, #tpu.memory_space<vmem>>, %arg16: memref<16x256xf32, #tpu.memory_space<vmem>>) attributes {dimension_semantics = [#tpu.dimension_semantics<parallel>], iteration_bounds = array<i64: 1>, scalar_prefetch = 0 : i64, scratch_operands = 0 : i64, tpu.core_type = #tpu.core_type<tc>, window_params = [{transform_indices = @transform_0, window_bounds = array<i64: 16, 256>}, {pipeline_mode = #tpu.pipeline_mode<synchronous>, transform_indices = @transform_1, window_bounds = array<i64: 8, 16>}, {pipeline_mode = #tpu.pipeline_mode<synchronous>, transform_indices = @transform_2, window_bounds = array<i64: 8, 1>}, {pipeline_mode = #tpu.pipeline_mode<synchronous>, transform_indices = @transform_3, window_bounds = array<i64: 256, 256>}, {pipeline_mode = #tpu.pipeline_mode<synchronous>, transform_indices = @transform_4, window_bounds = array<i64: 256, 256>}, {pipeline_mode = #tpu.pipeline_mode<synchronous>, transform_indices = @transform_5, window_bounds = array<i64: 8, 8>}, {pipeline_mode = #tpu.pipeline_mode<synchronous>, transform_indices = @transform_6, window_bounds = array<i64: 8, 8>}, {pipeline_mode = #tpu.pipeline_mode<synchronous>, transform_indices = @transform_7, window_bounds = array<i64: 8, 8>}, {pipeline_mode = #tpu.pipeline_mode<synchronous>, transform_indices = @transform_8, window_bounds = array<i64: 8, 8>}, {pipeline_mode = #tpu.pipeline_mode<synchronous>, transform_indices = @transform_9, window_bounds = array<i64: 8, 1>}, {pipeline_mode = #tpu.pipeline_mode<synchronous>, transform_indices = @transform_10, window_bounds = array<i64: 8, 1>}, {pipeline_mode = #tpu.pipeline_mode<synchronous>, transform_indices = @transform_11, window_bounds = array<i64: 256, 256>}, {pipeline_mode = #tpu.pipeline_mode<synchronous>, transform_indices = @transform_12, window_bounds = array<i64: 256, 256>}, {pipeline_mode = #tpu.pipeline_mode<synchronous>, transform_indices = @transform_13, window_bounds = array<i64: 16, 8>}, {pipeline_mode = #tpu.pipeline_mode<synchronous>, transform_indices = @transform_14, window_bounds = array<i64: 16, 1>}, {transform_indices = @transform_15, window_bounds = array<i64: 16, 256>}]} {
    %c0 = arith.constant 0 : index
    %c0_0 = arith.constant 0 : index
    %0 = vector.load %arg1[%c0, %c0_0] : memref<16x256xf32, #tpu.memory_space<vmem>>, vector<16x256xf32>
    %c0_1 = arith.constant 0 : index
    %c0_2 = arith.constant 0 : index
    %1 = vector.load %arg2[%c0_1, %c0_2] : memref<8x16xf32, #tpu.memory_space<vmem>>, vector<8x16xf32>
    %cst = arith.constant dense<0.000000e+00> : vector<8x256xf32>
    %2 = tpu.matmul %1, %0, %cst {dimension_numbers = #tpu.dot_dimension_numbers<[1], [0], [0], [1], [0, 0, 1, 1], [], []>} : vector<8x16xf32>, vector<16x256xf32>, vector<8x256xf32> -> vector<8x256xf32>
    %c0_3 = arith.constant 0 : index
    %c0_4 = arith.constant 0 : index
    %3 = vector.load %arg3[%c0_3, %c0_4] : memref<8x1xf32, #tpu.memory_space<vmem>>, vector<8x1xf32>
    %4 = vector.broadcast %3 : vector<8x1xf32> to vector<8x256xf32>
    %5 = arith.addf %2, %4 : vector<8x256xf32>
    %cst_5 = arith.constant 0.000000e+00 : f32
    %6 = vector.broadcast %cst_5 : f32 to vector<8x256xf32>
    %7 = arith.cmpf oge, %5, %6 : vector<8x256xf32>
    %cst_6 = arith.constant 2.000000e-01 : f32
    %8 = vector.broadcast %cst_6 : f32 to vector<8x256xf32>
    %9 = arith.mulf %8, %5 : vector<8x256xf32>
    %10 = arith.select %7, %5, %9 : vector<8x256xi1>, vector<8x256xf32>
    %c0_7 = arith.constant 0 : index
    %c0_8 = arith.constant 0 : index
    %11 = vector.load %arg4[%c0_7, %c0_8] : memref<256x256xf32, #tpu.memory_space<vmem>>, vector<256x256xf32>
    %cst_9 = arith.constant dense<0.000000e+00> : vector<8x256xf32>
    %12 = tpu.matmul %10, %11, %cst_9 {dimension_numbers = #tpu.dot_dimension_numbers<[1], [0], [0], [1], [0, 0, 1, 1], [], []>} : vector<8x256xf32>, vector<256x256xf32>, vector<8x256xf32> -> vector<8x256xf32>
    %c0_10 = arith.constant 0 : index
    %c0_11 = arith.constant 0 : index
    %13 = vector.load %arg5[%c0_10, %c0_11] : memref<256x256xf32, #tpu.memory_space<vmem>>, vector<256x256xf32>
    %cst_12 = arith.constant dense<0.000000e+00> : vector<8x256xf32>
    %14 = tpu.matmul %10, %13, %cst_12 {dimension_numbers = #tpu.dot_dimension_numbers<[1], [0], [0], [1], [0, 0, 1, 1], [], []>} : vector<8x256xf32>, vector<256x256xf32>, vector<8x256xf32> -> vector<8x256xf32>
    %c0_13 = arith.constant 0 : index
    %c0_14 = arith.constant 0 : index
    %15 = vector.load %arg6[%c0_13, %c0_14] : memref<8x8xf32, #tpu.memory_space<vmem>>, vector<8x8xf32>
    %cst_15 = arith.constant dense<0.000000e+00> : vector<8x256xf32>
    %16 = tpu.matmul %15, %12, %cst_15 {dimension_numbers = #tpu.dot_dimension_numbers<[1], [0], [0], [1], [0, 0, 1, 1], [], []>} : vector<8x8xf32>, vector<8x256xf32>, vector<8x256xf32> -> vector<8x256xf32>
    %c0_16 = arith.constant 0 : index
    %c0_17 = arith.constant 0 : index
    %17 = vector.load %arg7[%c0_16, %c0_17] : memref<8x8xf32, #tpu.memory_space<vmem>>, vector<8x8xf32>
    %cst_18 = arith.constant dense<0.000000e+00> : vector<8x256xf32>
    %18 = tpu.matmul %17, %14, %cst_18 {dimension_numbers = #tpu.dot_dimension_numbers<[1], [0], [0], [1], [0, 0, 1, 1], [], []>} : vector<8x8xf32>, vector<8x256xf32>, vector<8x256xf32> -> vector<8x256xf32>
    %19 = arith.addf %16, %18 : vector<8x256xf32>
    %c0_19 = arith.constant 0 : index
    %c0_20 = arith.constant 0 : index
    %20 = vector.load %arg10[%c0_19, %c0_20] : memref<8x1xf32, #tpu.memory_space<vmem>>, vector<8x1xf32>
    %21 = vector.broadcast %20 : vector<8x1xf32> to vector<8x256xf32>
    %22 = arith.addf %19, %21 : vector<8x256xf32>
    %cst_21 = arith.constant 0.000000e+00 : f32
    %23 = vector.broadcast %cst_21 : f32 to vector<8x256xf32>
    %24 = arith.cmpf oge, %22, %23 : vector<8x256xf32>
    %cst_22 = arith.constant 2.000000e-01 : f32
    %25 = vector.broadcast %cst_22 : f32 to vector<8x256xf32>
    %26 = arith.mulf %25, %22 : vector<8x256xf32>
    %27 = arith.select %24, %22, %26 : vector<8x256xi1>, vector<8x256xf32>
    %c0_23 = arith.constant 0 : index
    %c0_24 = arith.constant 0 : index
    %28 = vector.load %arg8[%c0_23, %c0_24] : memref<8x8xf32, #tpu.memory_space<vmem>>, vector<8x8xf32>
    %cst_25 = arith.constant dense<0.000000e+00> : vector<8x256xf32>
    %29 = tpu.matmul %28, %12, %cst_25 {dimension_numbers = #tpu.dot_dimension_numbers<[1], [0], [0], [1], [0, 0, 1, 1], [], []>} : vector<8x8xf32>, vector<8x256xf32>, vector<8x256xf32> -> vector<8x256xf32>
    %c0_26 = arith.constant 0 : index
    %c0_27 = arith.constant 0 : index
    %30 = vector.load %arg9[%c0_26, %c0_27] : memref<8x8xf32, #tpu.memory_space<vmem>>, vector<8x8xf32>
    %cst_28 = arith.constant dense<0.000000e+00> : vector<8x256xf32>
    %31 = tpu.matmul %30, %14, %cst_28 {dimension_numbers = #tpu.dot_dimension_numbers<[1], [0], [0], [1], [0, 0, 1, 1], [], []>} : vector<8x8xf32>, vector<8x256xf32>, vector<8x256xf32> -> vector<8x256xf32>
    %32 = arith.addf %29, %31 : vector<8x256xf32>
    %c0_29 = arith.constant 0 : index
    %c0_30 = arith.constant 0 : index
    %33 = vector.load %arg11[%c0_29, %c0_30] : memref<8x1xf32, #tpu.memory_space<vmem>>, vector<8x1xf32>
    %34 = vector.broadcast %33 : vector<8x1xf32> to vector<8x256xf32>
    %35 = arith.addf %32, %34 : vector<8x256xf32>
    %cst_31 = arith.constant 0.000000e+00 : f32
    %36 = vector.broadcast %cst_31 : f32 to vector<8x256xf32>
    %37 = arith.cmpf oge, %35, %36 : vector<8x256xf32>
    %cst_32 = arith.constant 2.000000e-01 : f32
    %38 = vector.broadcast %cst_32 : f32 to vector<8x256xf32>
    %39 = arith.mulf %38, %35 : vector<8x256xf32>
    %40 = arith.select %37, %35, %39 : vector<8x256xi1>, vector<8x256xf32>
    %c0_33 = arith.constant 0 : index
    %c0_34 = arith.constant 0 : index
    %41 = vector.load %arg12[%c0_33, %c0_34] : memref<256x256xf32, #tpu.memory_space<vmem>>, vector<256x256xf32>
    %cst_35 = arith.constant dense<0.000000e+00> : vector<8x256xf32>
    %42 = tpu.matmul %27, %41, %cst_35 {dimension_numbers = #tpu.dot_dimension_numbers<[1], [0], [0], [1], [0, 0, 1, 1], [], []>} : vector<8x256xf32>, vector<256x256xf32>, vector<8x256xf32> -> vector<8x256xf32>
    %c0_36 = arith.constant 0 : index
    %c0_37 = arith.constant 0 : index
    %43 = vector.load %arg13[%c0_36, %c0_37] : memref<256x256xf32, #tpu.memory_space<vmem>>, vector<256x256xf32>
    %cst_38 = arith.constant dense<0.000000e+00> : vector<8x256xf32>
    %44 = tpu.matmul %40, %43, %cst_38 {dimension_numbers = #tpu.dot_dimension_numbers<[1], [0], [0], [1], [0, 0, 1, 1], [], []>} : vector<8x256xf32>, vector<256x256xf32>, vector<8x256xf32> -> vector<8x256xf32>
    %45 = arith.addf %42, %44 : vector<8x256xf32>
    %c0_39 = arith.constant 0 : index
    %c0_40 = arith.constant 0 : index
    %46 = vector.load %arg14[%c0_39, %c0_40] : memref<16x8xf32, #tpu.memory_space<vmem>>, vector<16x8xf32>
    %47 = arith.addf %10, %45 : vector<8x256xf32>
    %cst_41 = arith.constant dense<0.000000e+00> : vector<16x256xf32>
    %48 = tpu.matmul %46, %47, %cst_41 {dimension_numbers = #tpu.dot_dimension_numbers<[1], [0], [0], [1], [0, 0, 1, 1], [], []>} : vector<16x8xf32>, vector<8x256xf32>, vector<16x256xf32> -> vector<16x256xf32>
    %c0_42 = arith.constant 0 : index
    %c0_43 = arith.constant 0 : index
    %49 = vector.load %arg15[%c0_42, %c0_43] : memref<16x1xf32, #tpu.memory_space<vmem>>, vector<16x1xf32>
    %50 = vector.broadcast %49 : vector<16x1xf32> to vector<16x256xf32>
    %51 = arith.addf %48, %50 : vector<16x256xf32>
    %c0_44 = arith.constant 0 : index
    %c0_45 = arith.constant 0 : index
    %52 = vector.load %arg16[%c0_44, %c0_45] : memref<16x256xf32, #tpu.memory_space<vmem>>, vector<16x256xf32>
    tpu.vector_store %arg16[%c0_44, %c0_45], %51 {strides = array<i32>} : memref<16x256xf32, #tpu.memory_space<vmem>>, vector<16x256xf32>,
    return
  }
  func.func @transform_0(%arg0: i32) -> (i32, i32) {
    %c0_i32 = arith.constant 0 : i32
    %c0_i32_0 = arith.constant 0 : i32
    return %arg0, %c0_i32 : i32, i32
  }
  func.func @transform_1(%arg0: i32) -> (i32, i32) {
    %c0_i32 = arith.constant 0 : i32
    %c0_i32_0 = arith.constant 0 : i32
    %c0_i32_1 = arith.constant 0 : i32
    return %c0_i32, %c0_i32_0 : i32, i32
  }
  func.func @transform_2(%arg0: i32) -> (i32, i32) {
    %c0_i32 = arith.constant 0 : i32
    %c0_i32_0 = arith.constant 0 : i32
    %c0_i32_1 = arith.constant 0 : i32
    return %c0_i32, %c0_i32_0 : i32, i32
  }
  func.func @transform_3(%arg0: i32) -> (i32, i32) {
    %c0_i32 = arith.constant 0 : i32
    %c0_i32_0 = arith.constant 0 : i32
    %c0_i32_1 = arith.constant 0 : i32
    return %c0_i32, %c0_i32_0 : i32, i32
  }
  func.func @transform_4(%arg0: i32) -> (i32, i32) {
    %c0_i32 = arith.constant 0 : i32
    %c0_i32_0 = arith.constant 0 : i32
    %c0_i32_1 = arith.constant 0 : i32
    return %c0_i32, %c0_i32_0 : i32, i32
  }
  func.func @transform_5(%arg0: i32) -> (i32, i32) {
    %c0_i32 = arith.constant 0 : i32
    %c0_i32_0 = arith.constant 0 : i32
    %c0_i32_1 = arith.constant 0 : i32
    return %c0_i32, %c0_i32_0 : i32, i32
  }
  func.func @transform_6(%arg0: i32) -> (i32, i32) {
    %c0_i32 = arith.constant 0 : i32
    %c0_i32_0 = arith.constant 0 : i32
    %c0_i32_1 = arith.constant 0 : i32
    return %c0_i32, %c0_i32_0 : i32, i32
  }
  func.func @transform_7(%arg0: i32) -> (i32, i32) {
    %c0_i32 = arith.constant 0 : i32
    %c0_i32_0 = arith.constant 0 : i32
    %c0_i32_1 = arith.constant 0 : i32
    return %c0_i32, %c0_i32_0 : i32, i32
  }
  func.func @transform_8(%arg0: i32) -> (i32, i32) {
    %c0_i32 = arith.constant 0 : i32
    %c0_i32_0 = arith.constant 0 : i32
    %c0_i32_1 = arith.constant 0 : i32
    return %c0_i32, %c0_i32_0 : i32, i32
  }
  func.func @transform_9(%arg0: i32) -> (i32, i32) {
    %c0_i32 = arith.constant 0 : i32
    %c0_i32_0 = arith.constant 0 : i32
    %c0_i32_1 = arith.constant 0 : i32
    return %c0_i32, %c0_i32_0 : i32, i32
  }
  func.func @transform_10(%arg0: i32) -> (i32, i32) {
    %c0_i32 = arith.constant 0 : i32
    %c0_i32_0 = arith.constant 0 : i32
    %c0_i32_1 = arith.constant 0 : i32
    return %c0_i32, %c0_i32_0 : i32, i32
  }
  func.func @transform_11(%arg0: i32) -> (i32, i32) {
    %c0_i32 = arith.constant 0 : i32
    %c0_i32_0 = arith.constant 0 : i32
    %c0_i32_1 = arith.constant 0 : i32
    return %c0_i32, %c0_i32_0 : i32, i32
  }
  func.func @transform_12(%arg0: i32) -> (i32, i32) {
    %c0_i32 = arith.constant 0 : i32
    %c0_i32_0 = arith.constant 0 : i32
    %c0_i32_1 = arith.constant 0 : i32
    return %c0_i32, %c0_i32_0 : i32, i32
  }
  func.func @transform_13(%arg0: i32) -> (i32, i32) {
    %c0_i32 = arith.constant 0 : i32
    %c0_i32_0 = arith.constant 0 : i32
    %c0_i32_1 = arith.constant 0 : i32
    return %c0_i32, %c0_i32_0 : i32, i32
  }
  func.func @transform_14(%arg0: i32) -> (i32, i32) {
    %c0_i32 = arith.constant 0 : i32
    %c0_i32_0 = arith.constant 0 : i32
    %c0_i32_1 = arith.constant 0 : i32
    return %c0_i32, %c0_i32_0 : i32, i32
  }
  func.func @transform_15(%arg0: i32) -> (i32, i32) {
    %c0_i32 = arith.constant 0 : i32
    %c0_i32_0 = arith.constant 0 : i32
    return %arg0, %c0_i32 : i32, i32
  }
}

</mosaic_0001>

<bundles_post_ra>
// kernel: apply.1
= control target key start
LH: loop header
LB: loop body
LE: loop exit
PB: predicated region body
PF: predicated region fallthrough
CT: control target
= control target key end

     0   :  { %20 = vsyncpa [#allocation3], 0  ;;  %s1474_s0 = inlined_call_operand.vmem [shape: f32[16,256], index: 0, kind: input, shape index: {}]   ;;  %s1475_s1 = inlined_call_operand.vmem [shape: f32[8,16], index: 1, kind: input, shape index: {}]   ;;  %s1476_s2 = inlined_call_operand.vmem [shape: f32[8,1], index: 2, kind: input, shape index: {}]   ;;  %s1477_s3 = inlined_call_operand.hbm [shape: f32[256,256], index: 3, kind: input, shape index: {}]   ;;  %s1478_s4 = inlined_call_operand.hbm [shape: f32[256,256], index: 4, kind: input, shape index: {}]   ;;  %s1479_s5 = inlined_call_operand.vmem [shape: f32[8,8], index: 5, kind: input, shape index: {}]   ;;  %s1480_s6 = inlined_call_operand.vmem [shape: f32[8,8], index: 6, kind: input, shape index: {}]   ;;  %s1481_s7 = inlined_call_operand.vmem [shape: f32[8,8], index: 7, kind: input, shape index: {}]   ;;  %s1482_s8 = inlined_call_operand.vmem [shape: f32[8,8], index: 8, kind: input, shape index: {}]   ;;  %s1483_s9 = inlined_call_operand.vmem [shape: f32[8,1], index: 9, kind: input, shape index: {}]   ;;  %s1484_s10 = inlined_call_operand.vmem [shape: f32[8,1], index: 10, kind: input, shape index: {}]   ;;  %s1485_s11 = inlined_call_operand.hbm [shape: f32[256,256], index: 11, kind: input, shape index: {}]   ;;  %s1486_s12 = inlined_call_operand.hbm [shape: f32[256,256], index: 12, kind: input, shape index: {}]   ;;  %s1487_s13 = inlined_call_operand.vmem [shape: f32[16,8], index: 13, kind: input, shape index: {}]   ;;  %s1488_s14 = inlined_call_operand.vmem [shape: f32[16,1], index: 14, kind: input, shape index: {}]   ;;  %s1489_s15 = inlined_call_operand.vmem [shape: f32[16,256], index: 15, kind: output, shape index: {}]  }
   0x1   :  { %21 = vsyncpa [#allocation5], 0 }
   0x2   :  { %22 = vsyncpa [#allocation8], 0  ;;  %s1279_s18 = smov [#allocation4]   ;;  %s1280_s20 = smov [#allocation2]  }
   0x3   :  { %s46_s19 = sshll.u32 %s1279_s18, 4  ;;  %s34_s21 = sshll.u32 %s1280_s20, 4  ;;  %s47_s19 = int_to_ptr.vmem [resolvable:$true] %s46_s19  ;;  %s35_s21 = int_to_ptr.vmem [resolvable:$true] %s34_s21 }
   0x4   :  { %s1201_s22 = scalar_lea.vmem %s47_s19, 8192  ;;  %p1206_p1 = scmp.lt.s32.totalorder %s47_s19, %s47_s19 }
   0x5   :  { %p1202_p0 = scmp.ne.s32.totalorder %s47_s19, %s1201_s22  ;;  %p1207_p2 = scmp.lt.s32.totalorder %s1201_s22, %s1201_s22 }
   0x7   :  { %p1208_p3 = por %p1207_p2, %p1206_p1 }
   0x9   :  { %p1209_p4 = pnand %p1208_p3, %p1202_p0 }
   0xb   :  { %1212 = shalt.err (!%p1209_p4)
}
   0xc   :  { %s1281_s23 = smov 256   ;;  %s1282_s24 = smov 16  }
   0xd   :  { %52 = dma.hbm_to_vmem [thread:$0]  %s1478_s4, 8192, %s47_s19, [#allocation5], %s1281_s23, %s1281_s23, %s1282_s24  }
   0xe   :  { %s1221_s27 = scalar_lea.vmem %s35_s21, 8192  ;;  %p1226_p6 = scmp.lt.s32.totalorder %s35_s21, %s35_s21 }
   0xf   :  { %p1222_p5 = scmp.ne.s32.totalorder %s35_s21, %s1221_s27  ;;  %p1227_p7 = scmp.lt.s32.totalorder %s1221_s27, %s1221_s27 }
  0x11   :  { %p1228_p8 = por %p1227_p7, %p1226_p6 }
  0x13   :  { %p1229_p9 = pnand %p1228_p8, %p1222_p5 }
  0x15   :  { %1232 = shalt.err (!%p1229_p9)
}
  0x16   :  { %40 = dma.hbm_to_vmem [thread:$0]  %s1477_s3, 8192, %s35_s21, [#allocation3], %s1281_s23, %s1281_s23, %s1282_s24  }
  0x17   :  { %s1283_s30 = smov [#allocation6]   ;;  %s1284_s17 = smov [#allocation7]  }
  0x18   :  { %s70_s16 = sshll.u32 %s1283_s30, 4  ;;  %s82_s18 = sshll.u32 %s1284_s17, 4  ;;  %s71_s16 = int_to_ptr.vmem [resolvable:$true] %s70_s16  ;;  %s83_s18 = int_to_ptr.vmem [resolvable:$true] %s82_s18 }
  0x19   :  { %s1241_s4 = scalar_lea.vmem %s71_s16, 8192  ;;  %p1246_p11 = scmp.lt.s32.totalorder %s71_s16, %s71_s16 }
  0x1a   :  { %p1242_p10 = scmp.ne.s32.totalorder %s71_s16, %s1241_s4  ;;  %p1247_p12 = scmp.lt.s32.totalorder %s1241_s4, %s1241_s4 }
  0x1c   :  { %p1248_p13 = por %p1247_p12, %p1246_p11 }
  0x1e   :  { %p1249_p0 = pnand %p1248_p13, %p1242_p10 }
  0x20   :  { %1252 = shalt.err (!%p1249_p0)
}
  0x21   :  { %76 = dma.hbm_to_vmem [thread:$0]  %s1485_s11, 8192, %s71_s16, [#allocation5], %s1281_s23, %s1281_s23, %s1282_s24  }
  0x22   :  { %s1261_s3 = scalar_lea.vmem %s83_s18, 8192  ;;  %p1266_p2 = scmp.lt.s32.totalorder %s83_s18, %s83_s18 }
  0x23   :  { %p1262_p1 = scmp.ne.s32.totalorder %s83_s18, %s1261_s3  ;;  %p1267_p3 = scmp.lt.s32.totalorder %s1261_s3, %s1261_s3 }
  0x25   :  { %p1268_p4 = por %p1267_p3, %p1266_p2 }
  0x27   :  { %p1269_p5 = pnand %p1268_p4, %p1262_p1 }
  0x29   :  { %1272 = shalt.err (!%p1269_p5)
}
  0x2a   :  { %88 = dma.hbm_to_vmem [thread:$0]  %s1486_s12, 8192, %s83_s18, [#allocation8], %s1281_s23, %s1281_s23, %s1282_s24  }
  0x2b   :  { %1273 = dma.done.wait [#allocation3], 8192  }
  0x2c   :  { %1274 = vsyncadd [#allocation3], 4294959104 }
  0x2d   :  { %1275 = dma.done.wait [#allocation5], 16384  }
  0x2e   :  { %1276 = vsyncadd [#allocation5], 4294950912 }
  0x2f   :  { %1277 = dma.done.wait [#allocation8], 8192  }
  0x30   :  { %1278 = vsyncadd [#allocation8], 4294959104  ;;  %v1285_v0 = vmov 0.0   ;;  %v1286_v1 = vmov 0   ;;  %v108_v2 = vld [vmem:[%s1474_s0 + $0x18] sm:$0xff]  ;;  %v107_v3 = vld [vmem:[%s1474_s0 + $0x10] sm:$0xff] }
  0x31   :  { %184 = vmatprep.mubr.f32.mxu0 %v1285_v0  ;;  %1191 = vset.pattern.permute.xlu0 %v1286_v1  ;;  %v106_v4 = vld [vmem:[%s1474_s0 + $0x8] sm:$0xff]  ;;  %v105_v5 = vld [vmem:[%s1474_s0] sm:$0xff]  ;;  %vm116_vm0 = vcmask 130048   ;;  %v228_v9 = vld [vmem:[#allocation2 + $0xf8] sm:$0xff]  ;;  %vm469_vm3 = vcmask 64512  }
  0x32   :  { %1192 = vset.pattern.permute.xlu1 %v1286_v1  ;;  %148 = vmatprep.subr.mxu0 %v108_v2  ;;  %v110_v6 = vld [vmem:[%s1476_s2] sm:$0xff]  ;;  %v363_v10 = vld [vmem:[#allocation4 + $0xf8] sm:$0xff]  ;;  %v227_v11 = vld [vmem:[#allocation2 + $0xf0] sm:$0xff] }
  0x33   :  { %149 = vmatpush1.msra.mxu0 %v107_v3  ;;  %v109_v7 = vld [vmem:[%s1475_s1] sm:$0xff]  ;;  %113 = vperm.xlu0 %1191, %v110_v6   ;;  %v362_v12 = vld [vmem:[#allocation4 + $0xf0] sm:$0xff]  ;;  %v226_v13 = vld [vmem:[#allocation2 + $0xe8] sm:$0xff] }
  0x34   :  { %v618_v8 = vld [vmem:[%s1483_s9] sm:$0xff]  ;;  %150 = vmatprep.subr.mxu0 %v106_v4  ;;  %261 = vmatprep.subr.mxu1 %v228_v9  ;;  %v361_v14 = vld [vmem:[#allocation4 + $0xe8] sm:$0xff]  ;;  %v224_v17 = vld [vmem:[#allocation2 + $0xd8] sm:$0xff] }
  0x35   :  { %151 = vmatpush1.msra.mxu0 %v105_v5  ;;  %262 = vmatpush1.msra.mxu1 %v227_v11  ;;  %v225_v15 = vld [vmem:[#allocation2 + $0xe0] sm:$0xff]  ;;  %v359_v18 = vld [vmem:[#allocation4 + $0xd8] sm:$0xff]  ;;  %v1071_v19 = vld [vmem:[%s1488_s14 + $0x8] sm:$0xff] }
  0x36   :  { %1176 = vmatmul.mubr.msk.f32.vlgmr.msra.gmra.mxu0 %vm116_vm0, %v109_v7  ;;  %396 = vmatprep.subr.mxu0 %v363_v10  ;;  %v360_v16 = vld [vmem:[#allocation4 + $0xe0] sm:$0xff]  ;;  %v223_v20 = vld [vmem:[#allocation2 + $0xd0] sm:$0xff]  ;;  %v222_v22 = vld [vmem:[#allocation2 + $0xc8] sm:$0xff] }
  0x37   :  { %621 = vperm.xlu0 %1191, %v618_v8   ;;  %397 = vmatpush1.msra.mxu0 %v362_v12  ;;  %v358_v21 = vld [vmem:[#allocation4 + $0xd0] sm:$0xff]  ;;  %v357_v23 = vld [vmem:[#allocation4 + $0xc8] sm:$0xff]  ;;  %v221_v24 = vld [vmem:[#allocation2 + $0xc0] sm:$0xff] }
  0x38   :  { %263 = vmatprep.subr.mxu1 %v226_v13  ;;  %398 = vmatprep.subr.mxu0 %v361_v14  ;;  %v356_v25 = vld [vmem:[#allocation4 + $0xc0] sm:$0xff]  ;;  %v220_v26 = vld [vmem:[#allocation2 + $0xb8] sm:$0xff]  ;;  %v219_v28 = vld [vmem:[#allocation2 + $0xb0] sm:$0xff] }
  0x39   :  { %264 = vmatpush1.msra.mxu1 %v225_v15  ;;  %399 = vmatpush1.msra.mxu0 %v360_v16  ;;  %v355_v27 = vld [vmem:[#allocation4 + $0xb8] sm:$0xff]  ;;  %v354_v29 = vld [vmem:[#allocation4 + $0xb0] sm:$0xff]  ;;  %v218_v30 = vld [vmem:[#allocation2 + $0xa8] sm:$0xff] }
  0x3a   :  { %265 = vmatprep.subr.mxu1 %v224_v17  ;;  %400 = vmatprep.subr.mxu0 %v359_v18  ;;  %v353_v31 = vld [vmem:[#allocation4 + $0xa8] sm:$0xff]  ;;  %v217_v32 = vld [vmem:[#allocation2 + $0xa0] sm:$0xff]  ;;  %v216_v34 = vld [vmem:[#allocation2 + $0x98] sm:$0xff] }
  0x3b   :  { %1079 = vperm.xlu0 %1191, %v1071_v19   ;;  %266 = vmatpush1.msra.mxu1 %v223_v20  ;;  %v352_v33 = vld [vmem:[#allocation4 + $0xa0] sm:$0xff]  ;;  %v351_v35 = vld [vmem:[#allocation4 + $0x98] sm:$0xff]  ;;  %v215_v36 = vld [vmem:[#allocation2 + $0x90] sm:$0xff] }
  0x3c   :  { %401 = vmatpush1.msra.mxu0 %v358_v21  ;;  %267 = vmatprep.subr.mxu1 %v222_v22  ;;  %v350_v37 = vld [vmem:[#allocation4 + $0x90] sm:$0xff]  ;;  %v214_v38 = vld [vmem:[#allocation2 + $0x88] sm:$0xff]  ;;  %v213_v40 = vld [vmem:[#allocation2 + $0x80] sm:$0xff] }
  0x3d   :  { %402 = vmatprep.subr.mxu0 %v357_v23  ;;  %268 = vmatpush1.msra.mxu1 %v221_v24  ;;  %v349_v39 = vld [vmem:[#allocation4 + $0x88] sm:$0xff]  ;;  %v348_v41 = vld [vmem:[#allocation4 + $0x80] sm:$0xff]  ;;  %v212_v42 = vld [vmem:[#allocation2 + $0x78] sm:$0xff] }
  0x3e   :  { %403 = vmatpush1.msra.mxu0 %v356_v25  ;;  %269 = vmatprep.subr.mxu1 %v220_v26  ;;  %v347_v43 = vld [vmem:[#allocation4 + $0x78] sm:$0xff]  ;;  %v211_v44 = vld [vmem:[#allocation2 + $0x70] sm:$0xff]  ;;  %v210_v46 = vld [vmem:[#allocation2 + $0x68] sm:$0xff] }
  0x3f   :  { %404 = vmatprep.subr.mxu0 %v355_v27  ;;  %270 = vmatpush1.msra.mxu1 %v219_v28  ;;  %v346_v45 = vld [vmem:[#allocation4 + $0x70] sm:$0xff]  ;;  %v345_v47 = vld [vmem:[#allocation4 + $0x68] sm:$0xff]  ;;  %v209_v48 = vld [vmem:[#allocation2 + $0x60] sm:$0xff] }
  0x40   :  { %405 = vmatpush1.msra.mxu0 %v354_v29  ;;  %271 = vmatprep.subr.mxu1 %v218_v30  ;;  %v344_v49 = vld [vmem:[#allocation4 + $0x60] sm:$0xff]  ;;  %v208_v50 = vld [vmem:[#allocation2 + $0x58] sm:$0xff]  ;;  %v207_v52 = vld [vmem:[#allocation2 + $0x50] sm:$0xff] }
  0x41   :  { %406 = vmatprep.subr.mxu0 %v353_v31  ;;  %272 = vmatpush1.msra.mxu1 %v217_v32  ;;  %v343_v51 = vld [vmem:[#allocation4 + $0x58] sm:$0xff]  ;;  %v342_v53 = vld [vmem:[#allocation4 + $0x50] sm:$0xff]  ;;  %v206_v54 = vld [vmem:[#allocation2 + $0x48] sm:$0xff] }
  0x42   :  { %407 = vmatpush1.msra.mxu0 %v352_v33  ;;  %273 = vmatprep.subr.mxu1 %v216_v34  ;;  %v341_v55 = vld [vmem:[#allocation4 + $0x48] sm:$0xff]  ;;  %v205_v56 = vld [vmem:[#allocation2 + $0x40] sm:$0xff]  ;;  %v204_v58 = vld [vmem:[#allocation2 + $0x38] sm:$0xff] }
  0x43   :  { %408 = vmatprep.subr.mxu0 %v351_v35  ;;  %274 = vmatpush1.msra.mxu1 %v215_v36  ;;  %v340_v57 = vld [vmem:[#allocation4 + $0x40] sm:$0xff]  ;;  %v339_v59 = vld [vmem:[#allocation4 + $0x38] sm:$0xff]  ;;  %v203_v60 = vld [vmem:[#allocation2 + $0x30] sm:$0xff] }
  0x44   :  { %409 = vmatpush1.msra.mxu0 %v350_v37  ;;  %275 = vmatprep.subr.mxu1 %v214_v38  ;;  %v338_v61 = vld [vmem:[#allocation4 + $0x30] sm:$0xff]  ;;  %v202_v62 = vld [vmem:[#allocation2 + $0x28] sm:$0xff]  ;;  %v201_v1 = vld [vmem:[#allocation2 + $0x20] sm:$0xff] }
  0x45   :  { %410 = vmatprep.subr.mxu0 %v349_v39  ;;  %276 = vmatpush1.msra.mxu1 %v213_v40  ;;  %v337_v63 = vld [vmem:[#allocation4 + $0x28] sm:$0xff]  ;;  %v336_v2 = vld [vmem:[#allocation4 + $0x20] sm:$0xff]  ;;  %v200_v3 = vld [vmem:[#allocation2 + $0x18] sm:$0xff] }
  0x46   :  { %411 = vmatpush1.msra.mxu0 %v348_v41  ;;  %277 = vmatprep.subr.mxu1 %v212_v42  ;;  %v335_v4 = vld [vmem:[#allocation4 + $0x18] sm:$0xff]  ;;  %v199_v5 = vld [vmem:[#allocation2 + $0x10] sm:$0xff]  ;;  %v198_v7 = vld [vmem:[#allocation2 + $0x8] sm:$0xff] }
  0x47   :  { %412 = vmatprep.subr.mxu0 %v347_v43  ;;  %278 = vmatpush1.msra.mxu1 %v211_v44  ;;  %v334_v6 = vld [vmem:[#allocation4 + $0x10] sm:$0xff]  ;;  %v333_v8 = vld [vmem:[#allocation4 + $0x8] sm:$0xff]  ;;  %v197_v9 = vld [vmem:[#allocation2] sm:$0xff] }
  0x48   :  { %413 = vmatpush1.msra.mxu0 %v346_v45  ;;  %279 = vmatprep.subr.mxu1 %v210_v46  ;;  %v332_v10 = vld [vmem:[#allocation4] sm:$0xff]  ;;  %v260_v11 = vld [vmem:[#allocation2 + $0x1f8] sm:$0xff]  ;;  %v259_v13 = vld [vmem:[#allocation2 + $0x1f0] sm:$0xff] }
  0x49   :  { %414 = vmatprep.subr.mxu0 %v345_v47  ;;  %280 = vmatpush1.msra.mxu1 %v209_v48  ;;  %v395_v12 = vld [vmem:[#allocation4 + $0x1f8] sm:$0xff]  ;;  %v394_v14 = vld [vmem:[#allocation4 + $0x1f0] sm:$0xff]  ;;  %v258_v15 = vld [vmem:[#allocation2 + $0x1e8] sm:$0xff] }
  0x4a   :  { %415 = vmatpush1.msra.mxu0 %v344_v49  ;;  %281 = vmatprep.subr.mxu1 %v208_v50  ;;  %v393_v16 = vld [vmem:[#allocation4 + $0x1e8] sm:$0xff]  ;;  %v257_v17 = vld [vmem:[#allocation2 + $0x1e0] sm:$0xff]  ;;  %v256_v19 = vld [vmem:[#allocation2 + $0x1d8] sm:$0xff] }
  0x4b   :  { %416 = vmatprep.subr.mxu0 %v343_v51  ;;  %282 = vmatpush1.msra.mxu1 %v207_v52  ;;  %v392_v18 = vld [vmem:[#allocation4 + $0x1e0] sm:$0xff]  ;;  %v391_v20 = vld [vmem:[#allocation4 + $0x1d8] sm:$0xff]  ;;  %v255_v21 = vld [vmem:[#allocation2 + $0x1d0] sm:$0xff] }
  0x4c   :  { %417 = vmatpush1.msra.mxu0 %v342_v53  ;;  %283 = vmatprep.subr.mxu1 %v206_v54  ;;  %v390_v22 = vld [vmem:[#allocation4 + $0x1d0] sm:$0xff]  ;;  %v254_v23 = vld [vmem:[#allocation2 + $0x1c8] sm:$0xff]  ;;  %v253_v25 = vld [vmem:[#allocation2 + $0x1c0] sm:$0xff] }
  0x4d   :  { %418 = vmatprep.subr.mxu0 %v341_v55  ;;  %284 = vmatpush1.msra.mxu1 %v205_v56  ;;  %v389_v24 = vld [vmem:[#allocation4 + $0x1c8] sm:$0xff]  ;;  %v388_v26 = vld [vmem:[#allocation4 + $0x1c0] sm:$0xff]  ;;  %v252_v27 = vld [vmem:[#allocation2 + $0x1b8] sm:$0xff] }
  0x4e   :  { %419 = vmatpush1.msra.mxu0 %v340_v57  ;;  %285 = vmatprep.subr.mxu1 %v204_v58  ;;  %v387_v28 = vld [vmem:[#allocation4 + $0x1b8] sm:$0xff]  ;;  %v251_v29 = vld [vmem:[#allocation2 + $0x1b0] sm:$0xff]  ;;  %v250_v31 = vld [vmem:[#allocation2 + $0x1a8] sm:$0xff] }
  0x4f   :  { %420 = vmatprep.subr.mxu0 %v339_v59  ;;  %286 = vmatpush1.msra.mxu1 %v203_v60  ;;  %v386_v30 = vld [vmem:[#allocation4 + $0x1b0] sm:$0xff]  ;;  %v385_v32 = vld [vmem:[#allocation4 + $0x1a8] sm:$0xff]  ;;  %v249_v33 = vld [vmem:[#allocation2 + $0x1a0] sm:$0xff] }
  0x50   :  { %421 = vmatpush1.msra.mxu0 %v338_v61  ;;  %287 = vmatprep.subr.mxu1 %v202_v62  ;;  %v384_v34 = vld [vmem:[#allocation4 + $0x1a0] sm:$0xff]  ;;  %v248_v35 = vld [vmem:[#allocation2 + $0x198] sm:$0xff]  ;;  %v247_v37 = vld [vmem:[#allocation2 + $0x190] sm:$0xff] }
  0x51   :  { %422 = vmatprep.subr.mxu0 %v337_v63  ;;  %288 = vmatpush1.msra.mxu1 %v201_v1  ;;  %v383_v36 = vld [vmem:[#allocation4 + $0x198] sm:$0xff]  ;;  %v382_v38 = vld [vmem:[#allocation4 + $0x190] sm:$0xff]  ;;  %v246_v39 = vld [vmem:[#allocation2 + $0x188] sm:$0xff] }
  0x52   :  { %423 = vmatpush1.msra.mxu0 %v336_v2  ;;  %289 = vmatprep.subr.mxu1 %v200_v3  ;;  %v381_v40 = vld [vmem:[#allocation4 + $0x188] sm:$0xff]  ;;  %v245_v41 = vld [vmem:[#allocation2 + $0x180] sm:$0xff]  ;;  %v244_v43 = vld [vmem:[#allocation2 + $0x178] sm:$0xff] }
  0x53   :  { %424 = vmatprep.subr.mxu0 %v335_v4  ;;  %290 = vmatpush1.msra.mxu1 %v199_v5  ;;  %v380_v42 = vld [vmem:[#allocation4 + $0x180] sm:$0xff]  ;;  %v379_v44 = vld [vmem:[#allocation4 + $0x178] sm:$0xff]  ;;  %v243_v45 = vld [vmem:[#allocation2 + $0x170] sm:$0xff] }
  0x54   :  { %425 = vmatpush1.msra.mxu0 %v334_v6  ;;  %291 = vmatprep.subr.mxu1 %v198_v7  ;;  %v378_v46 = vld [vmem:[#allocation4 + $0x170] sm:$0xff]  ;;  %v242_v47 = vld [vmem:[#allocation2 + $0x168] sm:$0xff]  ;;  %v241_v49 = vld [vmem:[#allocation2 + $0x160] sm:$0xff] }
  0x55   :  { %426 = vmatprep.subr.mxu0 %v333_v8  ;;  %292 = vmatpush1.msra.mxu1 %v197_v9  ;;  %v377_v48 = vld [vmem:[#allocation4 + $0x168] sm:$0xff]  ;;  %v376_v50 = vld [vmem:[#allocation4 + $0x160] sm:$0xff]  ;;  %v240_v51 = vld [vmem:[#allocation2 + $0x158] sm:$0xff] }
  0x56   :  { %427 = vmatpush1.msra.mxu0 %v332_v10  ;;  %293 = vmatprep.subr.mxu1 %v260_v11  ;;  %v375_v52 = vld [vmem:[#allocation4 + $0x158] sm:$0xff]  ;;  %v239_v53 = vld [vmem:[#allocation2 + $0x150] sm:$0xff]  ;;  %v238_v55 = vld [vmem:[#allocation2 + $0x148] sm:$0xff] }
  0x57   :  { %428 = vmatprep.subr.mxu0 %v395_v12  ;;  %294 = vmatpush2.msra.mxu1 %v259_v13  ;;  %v374_v54 = vld [vmem:[#allocation4 + $0x150] sm:$0xff]  ;;  %v373_v56 = vld [vmem:[#allocation4 + $0x148] sm:$0xff]  ;;  %v237_v57 = vld [vmem:[#allocation2 + $0x140] sm:$0xff] }
  0x58   :  { %429 = vmatpush2.msra.mxu0 %v394_v14  ;;  %295 = vmatprep.subr.mxu1 %v258_v15  ;;  %v372_v58 = vld [vmem:[#allocation4 + $0x140] sm:$0xff]  ;;  %v236_v59 = vld [vmem:[#allocation2 + $0x138] sm:$0xff]  ;;  %v235_v61 = vld [vmem:[#allocation2 + $0x130] sm:$0xff] }
  0x59   :  { %430 = vmatprep.subr.mxu0 %v393_v16  ;;  %296 = vmatpush2.msra.mxu1 %v257_v17  ;;  %v371_v60 = vld [vmem:[#allocation4 + $0x138] sm:$0xff]  ;;  %v370_v62 = vld [vmem:[#allocation4 + $0x130] sm:$0xff]  ;;  %v234_v63 = vld [vmem:[#allocation2 + $0x128] sm:$0xff] }
  0x5a   :  { %431 = vmatpush2.msra.mxu0 %v392_v18  ;;  %297 = vmatprep.subr.mxu1 %v256_v19  ;;  %v369_v1 = vld [vmem:[#allocation4 + $0x128] sm:$0xff]  ;;  %v233_v2 = vld [vmem:[#allocation2 + $0x120] sm:$0xff]  ;;  %v232_v4 = vld [vmem:[#allocation2 + $0x118] sm:$0xff] }
  0x5b   :  { %432 = vmatprep.subr.mxu0 %v391_v20  ;;  %298 = vmatpush2.msra.mxu1 %v255_v21  ;;  %v368_v3 = vld [vmem:[#allocation4 + $0x120] sm:$0xff]  ;;  %v367_v5 = vld [vmem:[#allocation4 + $0x118] sm:$0xff]  ;;  %v231_v6 = vld [vmem:[#allocation2 + $0x110] sm:$0xff] }
  0x5c   :  { %433 = vmatpush2.msra.mxu0 %v390_v22  ;;  %299 = vmatprep.subr.mxu1 %v254_v23  ;;  %v366_v7 = vld [vmem:[#allocation4 + $0x110] sm:$0xff]  ;;  %v230_v8 = vld [vmem:[#allocation2 + $0x108] sm:$0xff]  ;;  %v229_v10 = vld [vmem:[#allocation2 + $0x100] sm:$0xff] }
  0x5d   :  { %434 = vmatprep.subr.mxu0 %v389_v24  ;;  %300 = vmatpush2.msra.mxu1 %v253_v25  ;;  %v365_v9 = vld [vmem:[#allocation4 + $0x108] sm:$0xff]  ;;  %v364_v11 = vld [vmem:[#allocation4 + $0x100] sm:$0xff] }
  0x5e   :  { %435 = vmatpush2.msra.mxu0 %v388_v26  ;;  %301 = vmatprep.subr.mxu1 %v252_v27  ;;  %v782_v21 = vld [vmem:[%s1484_s10] sm:$0xff] }
  0x5f   :  { %436 = vmatprep.subr.mxu0 %v387_v28  ;;  %302 = vmatpush2.msra.mxu1 %v251_v29  ;;  %v1070_v22 = vld [vmem:[%s1488_s14] sm:$0xff] }
  0x60   :  { %437 = vmatpush2.msra.mxu0 %v386_v30  ;;  %303 = vmatprep.subr.mxu1 %v250_v31  ;;  %v468_v27 = vld [vmem:[%s1480_s6] sm:$0xff]  ;;  %v827_v31 = vld [vmem:[#allocation6 + $0xf8] sm:$0xff] }
  0x61   :  { %438 = vmatprep.subr.mxu0 %v385_v32  ;;  %304 = vmatpush2.msra.mxu1 %v249_v33  ;;  %v467_v28 = vld [vmem:[%s1479_s5] sm:$0xff]  ;;  %v891_v32 = vld [vmem:[#allocation7 + $0xf8] sm:$0xff]  ;;  %v826_v33 = vld [vmem:[#allocation6 + $0xf0] sm:$0xff] }
  0x62   :  { %439 = vmatpush2.msra.mxu0 %v384_v34  ;;  %305 = vmatprep.subr.mxu1 %v248_v35  ;;  %v633_v29 = vld [vmem:[%s1482_s8] sm:$0xff]  ;;  %v890_v34 = vld [vmem:[#allocation7 + $0xf0] sm:$0xff]  ;;  %v825_v35 = vld [vmem:[#allocation6 + $0xe8] sm:$0xff] }
  0x63   :  { %440 = vmatprep.subr.mxu0 %v383_v36  ;;  %306 = vmatpush2.msra.mxu1 %v247_v37  ;;  %v632_v30 = vld [vmem:[%s1481_s7] sm:$0xff]  ;;  %v889_v36 = vld [vmem:[#allocation7 + $0xe8] sm:$0xff] }
  0x64   :  { %441 = vmatpush2.msra.mxu0 %v382_v38  ;;  %307 = vmatprep.subr.mxu1 %v246_v39  ;;  %v824_v37 = vld [vmem:[#allocation6 + $0xe0] sm:$0xff]  ;;  %v823_v39 = vld [vmem:[#allocation6 + $0xd8] sm:$0xff] }
  0x65   :  { %442 = vmatprep.subr.mxu0 %v381_v40  ;;  %308 = vmatpush2.msra.mxu1 %v245_v41  ;;  %v888_v38 = vld [vmem:[#allocation7 + $0xe0] sm:$0xff]  ;;  %v887_v40 = vld [vmem:[#allocation7 + $0xd8] sm:$0xff]  ;;  %v822_v41 = vld [vmem:[#allocation6 + $0xd0] sm:$0xff] }
  0x66   :  { %443 = vmatpush2.msra.mxu0 %v380_v42  ;;  %309 = vmatprep.subr.mxu1 %v244_v43  ;;  %v886_v42 = vld [vmem:[#allocation7 + $0xd0] sm:$0xff]  ;;  %v821_v43 = vld [vmem:[#allocation6 + $0xc8] sm:$0xff] }
  0x67   :  { %444 = vmatprep.subr.mxu0 %v379_v44  ;;  %310 = vmatpush2.msra.mxu1 %v243_v45  ;;  %v885_v44 = vld [vmem:[#allocation7 + $0xc8] sm:$0xff]  ;;  %v820_v45 = vld [vmem:[#allocation6 + $0xc0] sm:$0xff] }
  0x68   :  { %445 = vmatpush2.msra.mxu0 %v378_v46  ;;  %311 = vmatprep.subr.mxu1 %v242_v47  ;;  %v884_v46 = vld [vmem:[#allocation7 + $0xc0] sm:$0xff]  ;;  %v819_v47 = vld [vmem:[#allocation6 + $0xb8] sm:$0xff] }
  0x69   :  { %446 = vmatprep.subr.mxu0 %v377_v48  ;;  %312 = vmatpush2.msra.mxu1 %v241_v49  ;;  %v883_v48 = vld [vmem:[#allocation7 + $0xb8] sm:$0xff]  ;;  %v818_v49 = vld [vmem:[#allocation6 + $0xb0] sm:$0xff] }
  0x6a   :  { %447 = vmatpush2.msra.mxu0 %v376_v50  ;;  %313 = vmatprep.subr.mxu1 %v240_v51  ;;  %v882_v50 = vld [vmem:[#allocation7 + $0xb0] sm:$0xff]  ;;  %v817_v51 = vld [vmem:[#allocation6 + $0xa8] sm:$0xff] }
  0x6b   :  { %448 = vmatprep.subr.mxu0 %v375_v52  ;;  %314 = vmatpush2.msra.mxu1 %v239_v53  ;;  %v881_v52 = vld [vmem:[#allocation7 + $0xa8] sm:$0xff]  ;;  %v816_v53 = vld [vmem:[#allocation6 + $0xa0] sm:$0xff] }
  0x6c   :  { %449 = vmatpush2.msra.mxu0 %v374_v54  ;;  %315 = vmatprep.subr.mxu1 %v238_v55  ;;  %v880_v54 = vld [vmem:[#allocation7 + $0xa0] sm:$0xff]  ;;  %v815_v55 = vld [vmem:[#allocation6 + $0x98] sm:$0xff] }
  0x6d   :  { %450 = vmatprep.subr.mxu0 %v373_v56  ;;  %316 = vmatpush2.msra.mxu1 %v237_v57  ;;  %v879_v56 = vld [vmem:[#allocation7 + $0x98] sm:$0xff]  ;;  %v814_v57 = vld [vmem:[#allocation6 + $0x90] sm:$0xff] }
  0x6e   :  { %451 = vmatpush2.msra.mxu0 %v372_v58  ;;  %317 = vmatprep.subr.mxu1 %v236_v59  ;;  %v878_v58 = vld [vmem:[#allocation7 + $0x90] sm:$0xff]  ;;  %v813_v59 = vld [vmem:[#allocation6 + $0x88] sm:$0xff] }
  0x6f   :  { %452 = vmatprep.subr.mxu0 %v371_v60  ;;  %318 = vmatpush2.msra.mxu1 %v235_v61  ;;  %v877_v60 = vld [vmem:[#allocation7 + $0x88] sm:$0xff]  ;;  %v812_v61 = vld [vmem:[#allocation6 + $0x80] sm:$0xff] }
  0x70   :  { %453 = vmatpush2.msra.mxu0 %v370_v62  ;;  %319 = vmatprep.subr.mxu1 %v234_v63  ;;  %v876_v62 = vld [vmem:[#allocation7 + $0x80] sm:$0xff]  ;;  %v811_v63 = vld [vmem:[#allocation6 + $0x78] sm:$0xff] }
  0x71   :  { %454 = vmatprep.subr.mxu0 %v369_v1  ;;  %320 = vmatpush2.msra.mxu1 %v233_v2  ;;  %v875_v1 = vld [vmem:[#allocation7 + $0x78] sm:$0xff]  ;;  %v810_v2 = vld [vmem:[#allocation6 + $0x70] sm:$0xff] }
  0x72   :  { %455 = vmatpush2.msra.mxu0 %v368_v3  ;;  %321 = vmatprep.subr.mxu1 %v232_v4  ;;  %v874_v3 = vld [vmem:[#allocation7 + $0x70] sm:$0xff]  ;;  %v809_v4 = vld [vmem:[#allocation6 + $0x68] sm:$0xff] }
  0x73   :  { %456 = vmatprep.subr.mxu0 %v367_v5  ;;  %322 = vmatpush2.msra.mxu1 %v231_v6  ;;  %v873_v5 = vld [vmem:[#allocation7 + $0x68] sm:$0xff]  ;;  %v808_v6 = vld [vmem:[#allocation6 + $0x60] sm:$0xff] }
  0x74   :  { %457 = vmatpush2.msra.mxu0 %v366_v7  ;;  %323 = vmatprep.subr.mxu1 %v230_v8  ;;  %v872_v7 = vld [vmem:[#allocation7 + $0x60] sm:$0xff]  ;;  %v807_v8 = vld [vmem:[#allocation6 + $0x58] sm:$0xff] }
  0x75   :  { %458 = vmatprep.subr.mxu0 %v365_v9  ;;  %324 = vmatpush2.msra.mxu1 %v229_v10  ;;  %v871_v9 = vld [vmem:[#allocation7 + $0x58] sm:$0xff]  ;;  %v806_v10 = vld [vmem:[#allocation6 + $0x50] sm:$0xff] }
  0x76   :  { %459 = vmatpush2.msra.mxu0 %v364_v11  ;;  %785 = vperm.xlu1 %1192, %v782_v21   ;;  %v870_v11 = vld [vmem:[#allocation7 + $0x50] sm:$0xff] }
  0x77   :  { %v866_v21 = vld [vmem:[#allocation7 + $0x30] sm:$0xff] }
  0x7a   :  { %1074 = vperm.xlu1 %1192, %v1070_v22   ;;  %v801_v22 = vld [vmem:[#allocation6 + $0x28] sm:$0xff] }
  0xae   :  { %v114_v12 = vpop.permute.xlu0 %113 }
  0xf6   :  { %v186_v13 = vpop.f32.mrf.mxu0 }
  0xf7   :  { %v187_v14 = vadd.f32 %v186_v13, %v114_v12  ;;  %v869_v13 = vld [vmem:[#allocation7 + $0x48] sm:$0xff] }
  0xf8   :  { %v188_v15 = vpop.f32.mrf.mxu0 }
  0xf9   :  { %v189_v16 = vadd.f32 %v188_v15, %v114_v12  ;;  %v193_v17 = vmul.f32 0.2, %v187_v14  ;;  %vm191_vm2 = vcmp.ge.f32.partialorder %v187_v14, 0.0  ;;  %v805_v12 = vld [vmem:[#allocation6 + $0x48] sm:$0xff]  ;;  %v868_v15 = vld [vmem:[#allocation7 + $0x40] sm:$0xff] }
  0xfb   :  { %v194_v18 = vmul.f32 0.2, %v189_v16  ;;  %vm192_vm1 = vcmp.ge.f32.partialorder %v189_v16, 0.0  ;;  %v1420_v20 = vsel %vm191_vm2, %v187_v14, %v193_v17  ;;  %v804_v14 = vld [vmem:[#allocation6 + $0x40] sm:$0xff]  ;;  %v867_v17 = vld [vmem:[#allocation7 + $0x38] sm:$0xff] }
  0xfd   :  { %v1416_v19 = vsel %vm192_vm1, %v189_v16, %v194_v18  ;;  %v803_v16 = vld [vmem:[#allocation6 + $0x38] sm:$0xff]  ;;  %v802_v18 = vld [vmem:[#allocation6 + $0x30] sm:$0xff] }
  0xfe   :  { %325 = vmatprep.mubr.f32.mxu1 %v1416_v19  ;;  %460 = vmatprep.mubr.f32.mxu0 %v1416_v19 }
  0xff   :  { %326 = vmatmul.mubr.f32.vlgmr.msra.gmra.mxu1 %v1420_v20  ;;  %461 = vmatmul.mubr.f32.vlgmr.msra.gmra.mxu0 %v1420_v20 }
 0x100   :  { %537 = vmatprep.mubr.f32.mxu1 %v1285_v0  ;;  %611 = vmatprep.mubr.f32.mxu0 %v1285_v0 }
 0x1bf   :  { %v327_v23 = vpop.f32.mrf.mxu1  ;;  %v462_v24 = vpop.f32.mrf.mxu0 }
 0x1c1   :  { %v329_v25 = vpop.f32.mrf.mxu1  ;;  %v464_v26 = vpop.f32.mrf.mxu0 }
 0x1c2   :  { %503 = vmatprep.subr.mxu1 %v464_v26  ;;  %577 = vmatprep.subr.mxu0 %v329_v25 }
 0x1c3   :  { %504 = vmatpush1.msra.mxu1 %v462_v24  ;;  %578 = vmatpush1.msra.mxu0 %v327_v23 }
 0x1c4   :  { %1177 = vmatmul.mubr.msk.f32.vlgmr.msra.gmra.mxu1 %vm469_vm3, %v468_v27  ;;  %1178 = vmatmul.mubr.msk.f32.vlgmr.msra.gmra.mxu0 %vm469_vm3, %v467_v28  ;;  %v863_v27 = vld [vmem:[#allocation7 + $0x18] sm:$0xff]  ;;  %v798_v28 = vld [vmem:[#allocation6 + $0x10] sm:$0xff] }
 0x1c5   :  { %667 = vmatprep.subr.mxu1 %v464_v26  ;;  %741 = vmatprep.subr.mxu0 %v329_v25  ;;  %v864_v25 = vld [vmem:[#allocation7 + $0x20] sm:$0xff]  ;;  %v799_v26 = vld [vmem:[#allocation6 + $0x18] sm:$0xff] }
 0x1c6   :  { %668 = vmatpush1.msra.mxu1 %v462_v24  ;;  %742 = vmatpush1.msra.mxu0 %v327_v23  ;;  %v865_v23 = vld [vmem:[#allocation7 + $0x28] sm:$0xff]  ;;  %v800_v24 = vld [vmem:[#allocation6 + $0x20] sm:$0xff] }
 0x1c7   :  { %701 = vmatprep.mubr.f32.mxu1 %v1285_v0  ;;  %775 = vmatprep.mubr.f32.mxu0 %v1285_v0 }
 0x1c8   :  { %1179 = vmatmul.mubr.msk.f32.vlgmr.msra.gmra.mxu1 %vm469_vm3, %v633_v29  ;;  %1180 = vmatmul.mubr.msk.f32.vlgmr.msra.gmra.mxu0 %vm469_vm3, %v632_v30  ;;  %v862_v29 = vld [vmem:[#allocation7 + $0x10] sm:$0xff]  ;;  %v797_v30 = vld [vmem:[#allocation6 + $0x8] sm:$0xff] }
 0x1c9   :  { %995 = vmatprep.subr.mxu0 %v827_v31  ;;  %924 = vmatprep.subr.mxu1 %v891_v32  ;;  %v861_v31 = vld [vmem:[#allocation7 + $0x8] sm:$0xff]  ;;  %v796_v32 = vld [vmem:[#allocation6] sm:$0xff] }
 0x1ca   :  { %996 = vmatpush1.msra.mxu0 %v826_v33  ;;  %925 = vmatpush1.msra.mxu1 %v890_v34  ;;  %v860_v33 = vld [vmem:[#allocation7] sm:$0xff]  ;;  %v859_v34 = vld [vmem:[#allocation6 + $0x1f8] sm:$0xff] }
 0x1cb   :  { %997 = vmatprep.subr.mxu0 %v825_v35  ;;  %926 = vmatprep.subr.mxu1 %v889_v36  ;;  %v923_v35 = vld [vmem:[#allocation7 + $0x1f8] sm:$0xff]  ;;  %v858_v36 = vld [vmem:[#allocation6 + $0x1f0] sm:$0xff] }
 0x1cc   :  { %998 = vmatpush1.msra.mxu0 %v824_v37  ;;  %927 = vmatpush1.msra.mxu1 %v888_v38  ;;  %v922_v37 = vld [vmem:[#allocation7 + $0x1f0] sm:$0xff]  ;;  %v857_v38 = vld [vmem:[#allocation6 + $0x1e8] sm:$0xff] }
 0x1cd   :  { %999 = vmatprep.subr.mxu0 %v823_v39  ;;  %928 = vmatprep.subr.mxu1 %v887_v40  ;;  %v921_v39 = vld [vmem:[#allocation7 + $0x1e8] sm:$0xff]  ;;  %v856_v40 = vld [vmem:[#allocation6 + $0x1e0] sm:$0xff] }
 0x1ce   :  { %1000 = vmatpush1.msra.mxu0 %v822_v41  ;;  %929 = vmatpush1.msra.mxu1 %v886_v42  ;;  %v920_v41 = vld [vmem:[#allocation7 + $0x1e0] sm:$0xff]  ;;  %v855_v42 = vld [vmem:[#allocation6 + $0x1d8] sm:$0xff] }
 0x1cf   :  { %1001 = vmatprep.subr.mxu0 %v821_v43  ;;  %930 = vmatprep.subr.mxu1 %v885_v44  ;;  %v919_v43 = vld [vmem:[#allocation7 + $0x1d8] sm:$0xff]  ;;  %v854_v44 = vld [vmem:[#allocation6 + $0x1d0] sm:$0xff] }
 0x1d0   :  { %1002 = vmatpush1.msra.mxu0 %v820_v45  ;;  %931 = vmatpush1.msra.mxu1 %v884_v46  ;;  %v918_v45 = vld [vmem:[#allocation7 + $0x1d0] sm:$0xff]  ;;  %v853_v46 = vld [vmem:[#allocation6 + $0x1c8] sm:$0xff] }
 0x1d1   :  { %1003 = vmatprep.subr.mxu0 %v819_v47  ;;  %932 = vmatprep.subr.mxu1 %v883_v48  ;;  %v917_v47 = vld [vmem:[#allocation7 + $0x1c8] sm:$0xff]  ;;  %v852_v48 = vld [vmem:[#allocation6 + $0x1c0] sm:$0xff] }
 0x1d2   :  { %1004 = vmatpush1.msra.mxu0 %v818_v49  ;;  %933 = vmatpush1.msra.mxu1 %v882_v50  ;;  %v916_v49 = vld [vmem:[#allocation7 + $0x1c0] sm:$0xff]  ;;  %v851_v50 = vld [vmem:[#allocation6 + $0x1b8] sm:$0xff] }
 0x1d3   :  { %1005 = vmatprep.subr.mxu0 %v817_v51  ;;  %934 = vmatprep.subr.mxu1 %v881_v52  ;;  %v915_v51 = vld [vmem:[#allocation7 + $0x1b8] sm:$0xff]  ;;  %v850_v52 = vld [vmem:[#allocation6 + $0x1b0] sm:$0xff] }
 0x1d4   :  { %1006 = vmatpush1.msra.mxu0 %v816_v53  ;;  %935 = vmatpush1.msra.mxu1 %v880_v54  ;;  %v914_v53 = vld [vmem:[#allocation7 + $0x1b0] sm:$0xff]  ;;  %v849_v54 = vld [vmem:[#allocation6 + $0x1a8] sm:$0xff] }
 0x1d5   :  { %1007 = vmatprep.subr.mxu0 %v815_v55  ;;  %936 = vmatprep.subr.mxu1 %v879_v56  ;;  %v913_v55 = vld [vmem:[#allocation7 + $0x1a8] sm:$0xff]  ;;  %v848_v56 = vld [vmem:[#allocation6 + $0x1a0] sm:$0xff] }
 0x1d6   :  { %1008 = vmatpush1.msra.mxu0 %v814_v57  ;;  %937 = vmatpush1.msra.mxu1 %v878_v58  ;;  %v912_v57 = vld [vmem:[#allocation7 + $0x1a0] sm:$0xff]  ;;  %v847_v58 = vld [vmem:[#allocation6 + $0x198] sm:$0xff] }
 0x1d7   :  { %1009 = vmatprep.subr.mxu0 %v813_v59  ;;  %938 = vmatprep.subr.mxu1 %v877_v60  ;;  %v911_v59 = vld [vmem:[#allocation7 + $0x198] sm:$0xff]  ;;  %v846_v60 = vld [vmem:[#allocation6 + $0x190] sm:$0xff] }
 0x1d8   :  { %1010 = vmatpush1.msra.mxu0 %v812_v61  ;;  %939 = vmatpush1.msra.mxu1 %v876_v62  ;;  %v910_v61 = vld [vmem:[#allocation7 + $0x190] sm:$0xff]  ;;  %v845_v62 = vld [vmem:[#allocation6 + $0x188] sm:$0xff] }
 0x1d9   :  { %1011 = vmatprep.subr.mxu0 %v811_v63  ;;  %940 = vmatprep.subr.mxu1 %v875_v1  ;;  %v909_v63 = vld [vmem:[#allocation7 + $0x188] sm:$0xff]  ;;  %v844_v1 = vld [vmem:[#allocation6 + $0x180] sm:$0xff] }
 0x1da   :  { %1012 = vmatpush1.msra.mxu0 %v810_v2  ;;  %941 = vmatpush1.msra.mxu1 %v874_v3  ;;  %v908_v2 = vld [vmem:[#allocation7 + $0x180] sm:$0xff]  ;;  %v843_v3 = vld [vmem:[#allocation6 + $0x178] sm:$0xff] }
 0x1db   :  { %1013 = vmatprep.subr.mxu0 %v809_v4  ;;  %942 = vmatprep.subr.mxu1 %v873_v5  ;;  %v907_v4 = vld [vmem:[#allocation7 + $0x178] sm:$0xff]  ;;  %v842_v5 = vld [vmem:[#allocation6 + $0x170] sm:$0xff] }
 0x1dc   :  { %1014 = vmatpush1.msra.mxu0 %v808_v6  ;;  %943 = vmatpush1.msra.mxu1 %v872_v7  ;;  %v841_v6 = vld [vmem:[#allocation6 + $0x168] sm:$0xff]  ;;  %v840_v7 = vld [vmem:[#allocation6 + $0x160] sm:$0xff] }
 0x1dd   :  { %1015 = vmatprep.subr.mxu0 %v807_v8  ;;  %944 = vmatprep.subr.mxu1 %v871_v9  ;;  %v839_v8 = vld [vmem:[#allocation6 + $0x158] sm:$0xff]  ;;  %v906_v9 = vld [vmem:[#allocation7 + $0x170] sm:$0xff] }
 0x1de   :  { %1016 = vmatpush1.msra.mxu0 %v806_v10  ;;  %945 = vmatpush1.msra.mxu1 %v870_v11  ;;  %v838_v10 = vld [vmem:[#allocation6 + $0x150] sm:$0xff]  ;;  %v905_v11 = vld [vmem:[#allocation7 + $0x168] sm:$0xff] }
 0x1df   :  { %1017 = vmatprep.subr.mxu0 %v805_v12  ;;  %946 = vmatprep.subr.mxu1 %v869_v13  ;;  %v837_v12 = vld [vmem:[#allocation6 + $0x148] sm:$0xff]  ;;  %v904_v13 = vld [vmem:[#allocation7 + $0x160] sm:$0xff] }
 0x1e0   :  { %1018 = vmatpush1.msra.mxu0 %v804_v14  ;;  %947 = vmatpush1.msra.mxu1 %v868_v15  ;;  %v836_v14 = vld [vmem:[#allocation6 + $0x140] sm:$0xff]  ;;  %v903_v15 = vld [vmem:[#allocation7 + $0x158] sm:$0xff] }
 0x1e1   :  { %1019 = vmatprep.subr.mxu0 %v803_v16  ;;  %948 = vmatprep.subr.mxu1 %v867_v17  ;;  %v835_v16 = vld [vmem:[#allocation6 + $0x138] sm:$0xff]  ;;  %v902_v17 = vld [vmem:[#allocation7 + $0x150] sm:$0xff] }
 0x1e2   :  { %1020 = vmatpush1.msra.mxu0 %v802_v18  ;;  %949 = vmatpush1.msra.mxu1 %v866_v21  ;;  %v834_v18 = vld [vmem:[#allocation6 + $0x130] sm:$0xff]  ;;  %v901_v21 = vld [vmem:[#allocation7 + $0x148] sm:$0xff] }
 0x1e3   :  { %1021 = vmatprep.subr.mxu0 %v801_v22  ;;  %950 = vmatprep.subr.mxu1 %v865_v23  ;;  %v833_v22 = vld [vmem:[#allocation6 + $0x128] sm:$0xff]  ;;  %v900_v23 = vld [vmem:[#allocation7 + $0x140] sm:$0xff] }
 0x1e4   :  { %1022 = vmatpush1.msra.mxu0 %v800_v24  ;;  %951 = vmatpush1.msra.mxu1 %v864_v25  ;;  %v832_v24 = vld [vmem:[#allocation6 + $0x120] sm:$0xff]  ;;  %v899_v25 = vld [vmem:[#allocation7 + $0x138] sm:$0xff] }
 0x1e5   :  { %1023 = vmatprep.subr.mxu0 %v799_v26  ;;  %952 = vmatprep.subr.mxu1 %v863_v27  ;;  %v831_v26 = vld [vmem:[#allocation6 + $0x118] sm:$0xff]  ;;  %v898_v27 = vld [vmem:[#allocation7 + $0x130] sm:$0xff] }
 0x1e6   :  { %1024 = vmatpush1.msra.mxu0 %v798_v28  ;;  %953 = vmatpush1.msra.mxu1 %v862_v29  ;;  %v830_v28 = vld [vmem:[#allocation6 + $0x110] sm:$0xff]  ;;  %v897_v29 = vld [vmem:[#allocation7 + $0x128] sm:$0xff] }
 0x1e7   :  { %1025 = vmatprep.subr.mxu0 %v797_v30  ;;  %954 = vmatprep.subr.mxu1 %v861_v31  ;;  %v829_v30 = vld [vmem:[#allocation6 + $0x108] sm:$0xff]  ;;  %v896_v31 = vld [vmem:[#allocation7 + $0x120] sm:$0xff] }
 0x1e8   :  { %1026 = vmatpush1.msra.mxu0 %v796_v32  ;;  %955 = vmatpush1.msra.mxu1 %v860_v33  ;;  %v828_v32 = vld [vmem:[#allocation6 + $0x100] sm:$0xff]  ;;  %v895_v33 = vld [vmem:[#allocation7 + $0x118] sm:$0xff] }
 0x1e9   :  { %1027 = vmatprep.subr.mxu0 %v859_v34  ;;  %956 = vmatprep.subr.mxu1 %v923_v35  ;;  %v894_v34 = vld [vmem:[#allocation7 + $0x110] sm:$0xff]  ;;  %v893_v35 = vld [vmem:[#allocation7 + $0x108] sm:$0xff] }
 0x1ea   :  { %1028 = vmatpush2.msra.mxu0 %v858_v36  ;;  %957 = vmatpush2.msra.mxu1 %v922_v37  ;;  %v892_v36 = vld [vmem:[#allocation7 + $0x100] sm:$0xff] }
 0x1eb   :  { %1029 = vmatprep.subr.mxu0 %v857_v38  ;;  %958 = vmatprep.subr.mxu1 %v921_v39  ;;  %v622_v39 = vpop.permute.xlu0 %621 }
 0x1ec   :  { %1030 = vmatpush2.msra.mxu0 %v856_v40  ;;  %959 = vmatpush2.msra.mxu1 %v920_v41 }
 0x1ed   :  { %1031 = vmatprep.subr.mxu0 %v855_v42  ;;  %960 = vmatprep.subr.mxu1 %v919_v43 }
 0x1ee   :  { %1032 = vmatpush2.msra.mxu0 %v854_v44  ;;  %961 = vmatpush2.msra.mxu1 %v918_v45 }
 0x1ef   :  { %1033 = vmatprep.subr.mxu0 %v853_v46  ;;  %962 = vmatprep.subr.mxu1 %v917_v47 }
 0x1f0   :  { %1034 = vmatpush2.msra.mxu0 %v852_v48  ;;  %963 = vmatpush2.msra.mxu1 %v916_v49  ;;  %v786_v48 = vpop.permute.xlu1 %785 }
 0x1f1   :  { %1035 = vmatprep.subr.mxu0 %v851_v50  ;;  %964 = vmatprep.subr.mxu1 %v915_v51 }
 0x1f2   :  { %1036 = vmatpush2.msra.mxu0 %v850_v52  ;;  %965 = vmatpush2.msra.mxu1 %v914_v53 }
 0x1f3   :  { %1037 = vmatprep.subr.mxu0 %v849_v54  ;;  %966 = vmatprep.subr.mxu1 %v913_v55 }
 0x1f4   :  { %1038 = vmatpush2.msra.mxu0 %v848_v56  ;;  %967 = vmatpush2.msra.mxu1 %v912_v57 }
 0x1f5   :  { %1039 = vmatprep.subr.mxu0 %v847_v58  ;;  %968 = vmatprep.subr.mxu1 %v911_v59 }
 0x1f6   :  { %1040 = vmatpush2.msra.mxu0 %v846_v60  ;;  %969 = vmatpush2.msra.mxu1 %v910_v61 }
 0x1f7   :  { %1041 = vmatprep.subr.mxu0 %v845_v62  ;;  %970 = vmatprep.subr.mxu1 %v909_v63 }
 0x1f8   :  { %1042 = vmatpush2.msra.mxu0 %v844_v1  ;;  %971 = vmatpush2.msra.mxu1 %v908_v2 }
 0x1f9   :  { %1043 = vmatprep.subr.mxu0 %v843_v3  ;;  %972 = vmatprep.subr.mxu1 %v907_v4 }
 0x1fa   :  { %1044 = vmatpush2.msra.mxu0 %v842_v5  ;;  %973 = vmatpush2.msra.mxu1 %v906_v9  ;;  %v1067_v9 = vld [vmem:[%s1487_s13 + $0x8] sm:$0xff] }
 0x1fb   :  { %1045 = vmatprep.subr.mxu0 %v841_v6  ;;  %974 = vmatprep.subr.mxu1 %v905_v11 }
 0x1fc   :  { %1046 = vmatpush2.msra.mxu0 %v840_v7  ;;  %975 = vmatpush2.msra.mxu1 %v904_v13  ;;  %v1080_v13 = vpop.permute.xlu0 %1079 }
 0x1fd   :  { %1047 = vmatprep.subr.mxu0 %v839_v8  ;;  %976 = vmatprep.subr.mxu1 %v903_v15  ;;  %v1066_v8 = vld [vmem:[%s1487_s13] sm:$0xff] }
 0x1fe   :  { %1048 = vmatpush2.msra.mxu0 %v838_v10  ;;  %977 = vmatpush2.msra.mxu1 %v902_v17  ;;  %v1075_v10 = vpop.permute.xlu1 %1074 }
 0x1ff   :  { %1049 = vmatprep.subr.mxu0 %v837_v12  ;;  %978 = vmatprep.subr.mxu1 %v901_v21 }
 0x200   :  { %1050 = vmatpush2.msra.mxu0 %v836_v14  ;;  %979 = vmatpush2.msra.mxu1 %v900_v23 }
 0x201   :  { %1051 = vmatprep.subr.mxu0 %v835_v16  ;;  %980 = vmatprep.subr.mxu1 %v899_v25 }
 0x202   :  { %1052 = vmatpush2.msra.mxu0 %v834_v18  ;;  %981 = vmatpush2.msra.mxu1 %v898_v27 }
 0x203   :  { %1053 = vmatprep.subr.mxu0 %v833_v22  ;;  %982 = vmatprep.subr.mxu1 %v897_v29 }
 0x204   :  { %1054 = vmatpush2.msra.mxu0 %v832_v24  ;;  %983 = vmatpush2.msra.mxu1 %v896_v31 }
 0x205   :  { %1055 = vmatprep.subr.mxu0 %v831_v26  ;;  %984 = vmatprep.subr.mxu1 %v895_v33 }
 0x206   :  { %1056 = vmatpush2.msra.mxu0 %v830_v28  ;;  %985 = vmatpush2.msra.mxu1 %v894_v34 }
 0x207   :  { %1057 = vmatprep.subr.mxu0 %v829_v30  ;;  %986 = vmatprep.subr.mxu1 %v893_v35 }
 0x208   :  { %1058 = vmatpush2.msra.mxu0 %v828_v32  ;;  %987 = vmatpush2.msra.mxu1 %v892_v36 }
 0x284   :  { %v539_v37 = vpop.f32.mrf.mxu1  ;;  %v613_v38 = vpop.f32.mrf.mxu0 }
 0x285   :  { %v614_v40 = vadd.f32 %v613_v38, %v539_v37 }
 0x286   :  { %v541_v41 = vpop.f32.mrf.mxu1  ;;  %v615_v42 = vpop.f32.mrf.mxu0 }
 0x287   :  { %v624_v43 = vadd.f32 %v622_v39, %v614_v40  ;;  %v616_v44 = vadd.f32 %v615_v42, %v541_v41 }
 0x288   :  { %v703_v45 = vpop.f32.mrf.mxu1  ;;  %v777_v46 = vpop.f32.mrf.mxu0 }
 0x289   :  { %v625_v47 = vadd.f32 %v622_v39, %v616_v44  ;;  %v778_v49 = vadd.f32 %v777_v46, %v703_v45  ;;  %v628_v50 = vmul.f32 0.2, %v624_v43  ;;  %vm626_vm4 = vcmp.ge.f32.partialorder %v624_v43, 0.0 }
 0x28a   :  { %v705_v51 = vpop.f32.mrf.mxu1  ;;  %v779_v52 = vpop.f32.mrf.mxu0 }
 0x28b   :  { %v788_v53 = vadd.f32 %v786_v48, %v778_v49  ;;  %v780_v54 = vadd.f32 %v779_v52, %v705_v51  ;;  %vm627_vm5 = vcmp.ge.f32.partialorder %v625_v47, 0.0  ;;  %v629_v55 = vmul.f32 0.2, %v625_v47 }
 0x28c   :  { %v630_v59 = vsel %vm626_vm4, %v624_v43, %v628_v50 }
 0x28d   :  { %v789_v56 = vadd.f32 %v786_v48, %v780_v54  ;;  %v631_v57 = vsel %vm627_vm5, %v625_v47, %v629_v55  ;;  %v792_v58 = vmul.f32 0.2, %v788_v53  ;;  %vm790_vm7 = vcmp.ge.f32.partialorder %v788_v53, 0.0 }
 0x28e   :  { %1059 = vmatprep.mubr.f32.mxu0 %v631_v57 }
 0x28f   :  { %1060 = vmatmul.mubr.f32.vlgmr.msra.gmra.mxu0 %v630_v59  ;;  %vm791_vm6 = vcmp.ge.f32.partialorder %v789_v56, 0.0  ;;  %v793_v60 = vmul.f32 0.2, %v789_v56  ;;  %v794_v62 = vsel %vm790_vm7, %v788_v53, %v792_v58 }
 0x291   :  { %v795_v61 = vsel %vm791_vm6, %v789_v56, %v793_v60 }
 0x292   :  { %988 = vmatprep.mubr.f32.mxu1 %v795_v61 }
 0x293   :  { %989 = vmatmul.mubr.f32.vlgmr.msra.gmra.mxu1 %v794_v62 }
 0x294   :  { %1152 = vmatprep.mubr.f32.mxu1 %v1285_v0 }
 0x34f   :  { %v1061_v63 = vpop.f32.mrf.mxu0 }
 0x351   :  { %v1063_v2 = vpop.f32.mrf.mxu0 }
 0x353   :  { %v990_v1 = vpop.f32.mrf.mxu1 }
 0x354   :  { %v1062_v3 = vadd.f32 %v1061_v63, %v990_v1 }
 0x355   :  { %v992_v4 = vpop.f32.mrf.mxu1 }
 0x356   :  { %v1064_v5 = vadd.f32 %v1063_v2, %v992_v4  ;;  %v1068_v7 = vadd.f32 %v1062_v3, %v1420_v20 }
 0x358   :  { %v1069_v6 = vadd.f32 %v1064_v5, %v1416_v19 }
 0x35a   :  { %1118 = vmatprep.subr.mxu1 %v1069_v6 }
 0x35b   :  { %1119 = vmatpush1.msra.mxu1 %v1068_v7 }
 0x35c   :  { %1181 = vmatmul.mubr.msk.f32.vlgmr.msra.gmra.mxu1 %vm469_vm3, %v1066_v8 }
 0x35d   :  { %1158 = vmatprep.mubr.f32.mxu1 %v1285_v0 }
 0x360   :  { %1182 = vmatmul.mubr.msk.f32.gmra.mxu1 %vm469_vm3, %v1067_v9 }
 0x41c   :  { %v1154_v19 = vpop.f32.mrf.mxu1 }
 0x41d   :  { %v1155_v11 = vadd.f32 %v1154_v19, %v1075_v10 }
 0x41e   :  { %v1156_v20 = vpop.f32.mrf.mxu1 }
 0x41f   :  { %1165 = vst [vmem:[%s1489_s15] sm:$0xff] %v1155_v11  ;;  %v1157_v12 = vadd.f32 %v1156_v20, %v1075_v10 }
 0x420   :  { %v1160_v14 = vpop.f32.mrf.mxu1 }
 0x421   :  { %1166 = vst [vmem:[%s1489_s15 + $0x8] sm:$0xff] %v1157_v12  ;;  %v1161_v0 = vadd.f32 %v1160_v14, %v1080_v13 }
 0x422   :  { %v1162_v15 = vpop.f32.mrf.mxu1 }
 0x423   :  { %1167 = vst [vmem:[%s1489_s15 + $0x10] sm:$0xff] %v1161_v0  ;;  %v1163_v16 = vadd.f32 %v1162_v15, %v1080_v13 }
 0x425   :  { %1168 = vst [vmem:[%s1489_s15 + $0x18] sm:$0xff] %v1163_v16 }
 0x426   :  { %1173 = vsyncpa [#allocation3], 1 }
 0x427   :  { %1174 = vsyncpa [#allocation5], 1 }
 0x428   :  { %1175 = vsyncpa [#allocation8], 1 }

// kernel: apply.1
= control target key start
LH: loop header
LB: loop body
LE: loop exit
PB: predicated region body
PF: predicated region fallthrough
CT: control target
= control target key end

     0   :  { %20 = vsyncpa [#allocation3], 0  ;;  %s1474_s0 = inlined_call_operand.vmem [shape: f32[16,256], index: 0, kind: input, shape index: {}]   ;;  %s1475_s1 = inlined_call_operand.vmem [shape: f32[8,16], index: 1, kind: input, shape index: {}]   ;;  %s1476_s2 = inlined_call_operand.vmem [shape: f32[8,1], index: 2, kind: input, shape index: {}]   ;;  %s1477_s3 = inlined_call_operand.hbm [shape: f32[256,256], index: 3, kind: input, shape index: {}]   ;;  %s1478_s4 = inlined_call_operand.hbm [shape: f32[256,256], index: 4, kind: input, shape index: {}]   ;;  %s1479_s5 = inlined_call_operand.vmem [shape: f32[8,8], index: 5, kind: input, shape index: {}]   ;;  %s1480_s6 = inlined_call_operand.vmem [shape: f32[8,8], index: 6, kind: input, shape index: {}]   ;;  %s1481_s7 = inlined_call_operand.vmem [shape: f32[8,8], index: 7, kind: input, shape index: {}]   ;;  %s1482_s8 = inlined_call_operand.vmem [shape: f32[8,8], index: 8, kind: input, shape index: {}]   ;;  %s1483_s9 = inlined_call_operand.vmem [shape: f32[8,1], index: 9, kind: input, shape index: {}]   ;;  %s1484_s10 = inlined_call_operand.vmem [shape: f32[8,1], index: 10, kind: input, shape index: {}]   ;;  %s1485_s11 = inlined_call_operand.hbm [shape: f32[256,256], index: 11, kind: input, shape index: {}]   ;;  %s1486_s12 = inlined_call_operand.hbm [shape: f32[256,256], index: 12, kind: input, shape index: {}]   ;;  %s1487_s13 = inlined_call_operand.vmem [shape: f32[16,8], index: 13, kind: input, shape index: {}]   ;;  %s1488_s14 = inlined_call_operand.vmem [shape: f32[16,1], index: 14, kind: input, shape index: {}]   ;;  %s1489_s15 = inlined_call_operand.vmem [shape: f32[16,256], index: 15, kind: output, shape index: {}]  }
   0x1   :  { %21 = vsyncpa [#allocation5], 0 }
   0x2   :  { %22 = vsyncpa [#allocation8], 0  ;;  %s1279_s18 = smov [#allocation4]   ;;  %s1280_s20 = smov [#allocation2]  }
   0x3   :  { %s46_s19 = sshll.u32 %s1279_s18, 4  ;;  %s34_s21 = sshll.u32 %s1280_s20, 4  ;;  %s47_s19 = int_to_ptr.vmem [resolvable:$true] %s46_s19  ;;  %s35_s21 = int_to_ptr.vmem [resolvable:$true] %s34_s21 }
   0x4   :  { %s1201_s22 = scalar_lea.vmem %s47_s19, 8192  ;;  %p1206_p1 = scmp.lt.s32.totalorder %s47_s19, %s47_s19 }
   0x5   :  { %p1202_p0 = scmp.ne.s32.totalorder %s47_s19, %s1201_s22  ;;  %p1207_p2 = scmp.lt.s32.totalorder %s1201_s22, %s1201_s22 }
   0x7   :  { %p1208_p3 = por %p1207_p2, %p1206_p1 }
   0x9   :  { %p1209_p4 = pnand %p1208_p3, %p1202_p0 }
   0xb   :  { %1212 = shalt.err (!%p1209_p4)
}
   0xc   :  { %s1281_s23 = smov 256   ;;  %s1282_s24 = smov 16  }
   0xd   :  { %52 = dma.hbm_to_vmem [thread:$0]  %s1478_s4, 8192, %s47_s19, [#allocation5], %s1281_s23, %s1281_s23, %s1282_s24  }
   0xe   :  { %s1221_s27 = scalar_lea.vmem %s35_s21, 8192  ;;  %p1226_p6 = scmp.lt.s32.totalorder %s35_s21, %s35_s21 }
   0xf   :  { %p1222_p5 = scmp.ne.s32.totalorder %s35_s21, %s1221_s27  ;;  %p1227_p7 = scmp.lt.s32.totalorder %s1221_s27, %s1221_s27 }
  0x11   :  { %p1228_p8 = por %p1227_p7, %p1226_p6 }
  0x13   :  { %p1229_p9 = pnand %p1228_p8, %p1222_p5 }
  0x15   :  { %1232 = shalt.err (!%p1229_p9)
}
  0x16   :  { %40 = dma.hbm_to_vmem [thread:$0]  %s1477_s3, 8192, %s35_s21, [#allocation3], %s1281_s23, %s1281_s23, %s1282_s24  }
  0x17   :  { %s1283_s30 = smov [#allocation6]   ;;  %s1284_s17 = smov [#allocation7]  }
  0x18   :  { %s70_s16 = sshll.u32 %s1283_s30, 4  ;;  %s82_s18 = sshll.u32 %s1284_s17, 4  ;;  %s71_s16 = int_to_ptr.vmem [resolvable:$true] %s70_s16  ;;  %s83_s18 = int_to_ptr.vmem [resolvable:$true] %s82_s18 }
  0x19   :  { %s1241_s4 = scalar_lea.vmem %s71_s16, 8192  ;;  %p1246_p11 = scmp.lt.s32.totalorder %s71_s16, %s71_s16 }
  0x1a   :  { %p1242_p10 = scmp.ne.s32.totalorder %s71_s16, %s1241_s4  ;;  %p1247_p12 = scmp.lt.s32.totalorder %s1241_s4, %s1241_s4 }
  0x1c   :  { %p1248_p13 = por %p1247_p12, %p1246_p11 }
  0x1e   :  { %p1249_p0 = pnand %p1248_p13, %p1242_p10 }
  0x20   :  { %1252 = shalt.err (!%p1249_p0)
}
  0x21   :  { %76 = dma.hbm_to_vmem [thread:$0]  %s1485_s11, 8192, %s71_s16, [#allocation5], %s1281_s23, %s1281_s23, %s1282_s24  }
  0x22   :  { %s1261_s3 = scalar_lea.vmem %s83_s18, 8192  ;;  %p1266_p2 = scmp.lt.s32.totalorder %s83_s18, %s83_s18 }
  0x23   :  { %p1262_p1 = scmp.ne.s32.totalorder %s83_s18, %s1261_s3  ;;  %p1267_p3 = scmp.lt.s32.totalorder %s1261_s3, %s1261_s3 }
  0x25   :  { %p1268_p4 = por %p1267_p3, %p1266_p2 }
  0x27   :  { %p1269_p5 = pnand %p1268_p4, %p1262_p1 }
  0x29   :  { %1272 = shalt.err (!%p1269_p5)
}
  0x2a   :  { %88 = dma.hbm_to_vmem [thread:$0]  %s1486_s12, 8192, %s83_s18, [#allocation8], %s1281_s23, %s1281_s23, %s1282_s24  }
  0x2b   :  { %1273 = dma.done.wait [#allocation3], 8192  }
  0x2c   :  { %1274 = vsyncadd [#allocation3], 4294959104 }
  0x2d   :  { %1275 = dma.done.wait [#allocation5], 16384  }
  0x2e   :  { %1276 = vsyncadd [#allocation5], 4294950912 }
  0x2f   :  { %1277 = dma.done.wait [#allocation8], 8192  }
  0x30   :  { %1278 = vsyncadd [#allocation8], 4294959104  ;;  %v1285_v0 = vmov 0.0   ;;  %v1286_v1 = vmov 0   ;;  %v108_v2 = vld [vmem:[%s1474_s0 + $0x18] sm:$0xff]  ;;  %v107_v3 = vld [vmem:[%s1474_s0 + $0x10] sm:$0xff] }
  0x31   :  { %184 = vmatprep.mubr.f32.mxu0 %v1285_v0  ;;  %1191 = vset.pattern.permute.xlu0 %v1286_v1  ;;  %v106_v4 = vld [vmem:[%s1474_s0 + $0x8] sm:$0xff]  ;;  %v105_v5 = vld [vmem:[%s1474_s0] sm:$0xff]  ;;  %vm116_vm0 = vcmask 130048   ;;  %v228_v9 = vld [vmem:[#allocation2 + $0xf8] sm:$0xff]  ;;  %vm469_vm3 = vcmask 64512  }
  0x32   :  { %1192 = vset.pattern.permute.xlu1 %v1286_v1  ;;  %148 = vmatprep.subr.mxu0 %v108_v2  ;;  %v110_v6 = vld [vmem:[%s1476_s2] sm:$0xff]  ;;  %v363_v10 = vld [vmem:[#allocation4 + $0xf8] sm:$0xff]  ;;  %v227_v11 = vld [vmem:[#allocation2 + $0xf0] sm:$0xff] }
  0x33   :  { %149 = vmatpush1.msra.mxu0 %v107_v3  ;;  %v109_v7 = vld [vmem:[%s1475_s1] sm:$0xff]  ;;  %113 = vperm.xlu0 %1191, %v110_v6   ;;  %v362_v12 = vld [vmem:[#allocation4 + $0xf0] sm:$0xff]  ;;  %v226_v13 = vld [vmem:[#allocation2 + $0xe8] sm:$0xff] }
  0x34   :  { %v618_v8 = vld [vmem:[%s1483_s9] sm:$0xff]  ;;  %150 = vmatprep.subr.mxu0 %v106_v4  ;;  %261 = vmatprep.subr.mxu1 %v228_v9  ;;  %v361_v14 = vld [vmem:[#allocation4 + $0xe8] sm:$0xff]  ;;  %v224_v17 = vld [vmem:[#allocation2 + $0xd8] sm:$0xff] }
  0x35   :  { %151 = vmatpush1.msra.mxu0 %v105_v5  ;;  %262 = vmatpush1.msra.mxu1 %v227_v11  ;;  %v225_v15 = vld [vmem:[#allocation2 + $0xe0] sm:$0xff]  ;;  %v359_v18 = vld [vmem:[#allocation4 + $0xd8] sm:$0xff]  ;;  %v1071_v19 = vld [vmem:[%s1488_s14 + $0x8] sm:$0xff] }
  0x36   :  { %1176 = vmatmul.mubr.msk.f32.vlgmr.msra.gmra.mxu0 %vm116_vm0, %v109_v7  ;;  %396 = vmatprep.subr.mxu0 %v363_v10  ;;  %v360_v16 = vld [vmem:[#allocation4 + $0xe0] sm:$0xff]  ;;  %v223_v20 = vld [vmem:[#allocation2 + $0xd0] sm:$0xff]  ;;  %v222_v22 = vld [vmem:[#allocation2 + $0xc8] sm:$0xff] }
  0x37   :  { %621 = vperm.xlu0 %1191, %v618_v8   ;;  %397 = vmatpush1.msra.mxu0 %v362_v12  ;;  %v358_v21 = vld [vmem:[#allocation4 + $0xd0] sm:$0xff]  ;;  %v357_v23 = vld [vmem:[#allocation4 + $0xc8] sm:$0xff]  ;;  %v221_v24 = vld [vmem:[#allocation2 + $0xc0] sm:$0xff] }
  0x38   :  { %263 = vmatprep.subr.mxu1 %v226_v13  ;;  %398 = vmatprep.subr.mxu0 %v361_v14  ;;  %v356_v25 = vld [vmem:[#allocation4 + $0xc0] sm:$0xff]  ;;  %v220_v26 = vld [vmem:[#allocation2 + $0xb8] sm:$0xff]  ;;  %v219_v28 = vld [vmem:[#allocation2 + $0xb0] sm:$0xff] }
  0x39   :  { %264 = vmatpush1.msra.mxu1 %v225_v15  ;;  %399 = vmatpush1.msra.mxu0 %v360_v16  ;;  %v355_v27 = vld [vmem:[#allocation4 + $0xb8] sm:$0xff]  ;;  %v354_v29 = vld [vmem:[#allocation4 + $0xb0] sm:$0xff]  ;;  %v218_v30 = vld [vmem:[#allocation2 + $0xa8] sm:$0xff] }
  0x3a   :  { %265 = vmatprep.subr.mxu1 %v224_v17  ;;  %400 = vmatprep.subr.mxu0 %v359_v18  ;;  %v353_v31 = vld [vmem:[#allocation4 + $0xa8] sm:$0xff]  ;;  %v217_v32 = vld [vmem:[#allocation2 + $0xa0] sm:$0xff]  ;;  %v216_v34 = vld [vmem:[#allocation2 + $0x98] sm:$0xff] }
  0x3b   :  { %1079 = vperm.xlu0 %1191, %v1071_v19   ;;  %266 = vmatpush1.msra.mxu1 %v223_v20  ;;  %v352_v33 = vld [vmem:[#allocation4 + $0xa0] sm:$0xff]  ;;  %v351_v35 = vld [vmem:[#allocation4 + $0x98] sm:$0xff]  ;;  %v215_v36 = vld [vmem:[#allocation2 + $0x90] sm:$0xff] }
  0x3c   :  { %401 = vmatpush1.msra.mxu0 %v358_v21  ;;  %267 = vmatprep.subr.mxu1 %v222_v22  ;;  %v350_v37 = vld [vmem:[#allocation4 + $0x90] sm:$0xff]  ;;  %v214_v38 = vld [vmem:[#allocation2 + $0x88] sm:$0xff]  ;;  %v213_v40 = vld [vmem:[#allocation2 + $0x80] sm:$0xff] }
  0x3d   :  { %402 = vmatprep.subr.mxu0 %v357_v23  ;;  %268 = vmatpush1.msra.mxu1 %v221_v24  ;;  %v349_v39 = vld [vmem:[#allocation4 + $0x88] sm:$0xff]  ;;  %v348_v41 = vld [vmem:[#allocation4 + $0x80] sm:$0xff]  ;;  %v212_v42 = vld [vmem:[#allocation2 + $0x78] sm:$0xff] }
  0x3e   :  { %403 = vmatpush1.msra.mxu0 %v356_v25  ;;  %269 = vmatprep.subr.mxu1 %v220_v26  ;;  %v347_v43 = vld [vmem:[#allocation4 + $0x78] sm:$0xff]  ;;  %v211_v44 = vld [vmem:[#allocation2 + $0x70] sm:$0xff]  ;;  %v210_v46 = vld [vmem:[#allocation2 + $0x68] sm:$0xff] }
  0x3f   :  { %404 = vmatprep.subr.mxu0 %v355_v27  ;;  %270 = vmatpush1.msra.mxu1 %v219_v28  ;;  %v346_v45 = vld [vmem:[#allocation4 + $0x70] sm:$0xff]  ;;  %v345_v47 = vld [vmem:[#allocation4 + $0x68] sm:$0xff]  ;;  %v209_v48 = vld [vmem:[#allocation2 + $0x60] sm:$0xff] }
  0x40   :  { %405 = vmatpush1.msra.mxu0 %v354_v29  ;;  %271 = vmatprep.subr.mxu1 %v218_v30  ;;  %v344_v49 = vld [vmem:[#allocation4 + $0x60] sm:$0xff]  ;;  %v208_v50 = vld [vmem:[#allocation2 + $0x58] sm:$0xff]  ;;  %v207_v52 = vld [vmem:[#allocation2 + $0x50] sm:$0xff] }
  0x41   :  { %406 = vmatprep.subr.mxu0 %v353_v31  ;;  %272 = vmatpush1.msra.mxu1 %v217_v32  ;;  %v343_v51 = vld [vmem:[#allocation4 + $0x58] sm:$0xff]  ;;  %v342_v53 = vld [vmem:[#allocation4 + $0x50] sm:$0xff]  ;;  %v206_v54 = vld [vmem:[#allocation2 + $0x48] sm:$0xff] }
  0x42   :  { %407 = vmatpush1.msra.mxu0 %v352_v33  ;;  %273 = vmatprep.subr.mxu1 %v216_v34  ;;  %v341_v55 = vld [vmem:[#allocation4 + $0x48] sm:$0xff]  ;;  %v205_v56 = vld [vmem:[#allocation2 + $0x40] sm:$0xff]  ;;  %v204_v58 = vld [vmem:[#allocation2 + $0x38] sm:$0xff] }
  0x43   :  { %408 = vmatprep.subr.mxu0 %v351_v35  ;;  %274 = vmatpush1.msra.mxu1 %v215_v36  ;;  %v340_v57 = vld [vmem:[#allocation4 + $0x40] sm:$0xff]  ;;  %v339_v59 = vld [vmem:[#allocation4 + $0x38] sm:$0xff]  ;;  %v203_v60 = vld [vmem:[#allocation2 + $0x30] sm:$0xff] }
  0x44   :  { %409 = vmatpush1.msra.mxu0 %v350_v37  ;;  %275 = vmatprep.subr.mxu1 %v214_v38  ;;  %v338_v61 = vld [vmem:[#allocation4 + $0x30] sm:$0xff]  ;;  %v202_v62 = vld [vmem:[#allocation2 + $0x28] sm:$0xff]  ;;  %v201_v1 = vld [vmem:[#allocation2 + $0x20] sm:$0xff] }
  0x45   :  { %410 = vmatprep.subr.mxu0 %v349_v39  ;;  %276 = vmatpush1.msra.mxu1 %v213_v40  ;;  %v337_v63 = vld [vmem:[#allocation4 + $0x28] sm:$0xff]  ;;  %v336_v2 = vld [vmem:[#allocation4 + $0x20] sm:$0xff]  ;;  %v200_v3 = vld [vmem:[#allocation2 + $0x18] sm:$0xff] }
  0x46   :  { %411 = vmatpush1.msra.mxu0 %v348_v41  ;;  %277 = vmatprep.subr.mxu1 %v212_v42  ;;  %v335_v4 = vld [vmem:[#allocation4 + $0x18] sm:$0xff]  ;;  %v199_v5 = vld [vmem:[#allocation2 + $0x10] sm:$0xff]  ;;  %v198_v7 = vld [vmem:[#allocation2 + $0x8] sm:$0xff] }
  0x47   :  { %412 = vmatprep.subr.mxu0 %v347_v43  ;;  %278 = vmatpush1.msra.mxu1 %v211_v44  ;;  %v334_v6 = vld [vmem:[#allocation4 + $0x10] sm:$0xff]  ;;  %v333_v8 = vld [vmem:[#allocation4 + $0x8] sm:$0xff]  ;;  %v197_v9 = vld [vmem:[#allocation2] sm:$0xff] }
  0x48   :  { %413 = vmatpush1.msra.mxu0 %v346_v45  ;;  %279 = vmatprep.subr.mxu1 %v210_v46  ;;  %v332_v10 = vld [vmem:[#allocation4] sm:$0xff]  ;;  %v260_v11 = vld [vmem:[#allocation2 + $0x1f8] sm:$0xff]  ;;  %v259_v13 = vld [vmem:[#allocation2 + $0x1f0] sm:$0xff] }
  0x49   :  { %414 = vmatprep.subr.mxu0 %v345_v47  ;;  %280 = vmatpush1.msra.mxu1 %v209_v48  ;;  %v395_v12 = vld [vmem:[#allocation4 + $0x1f8] sm:$0xff]  ;;  %v394_v14 = vld [vmem:[#allocation4 + $0x1f0] sm:$0xff]  ;;  %v258_v15 = vld [vmem:[#allocation2 + $0x1e8] sm:$0xff] }
  0x4a   :  { %415 = vmatpush1.msra.mxu0 %v344_v49  ;;  %281 = vmatprep.subr.mxu1 %v208_v50  ;;  %v393_v16 = vld [vmem:[#allocation4 + $0x1e8] sm:$0xff]  ;;  %v257_v17 = vld [vmem:[#allocation2 + $0x1e0] sm:$0xff]  ;;  %v256_v19 = vld [vmem:[#allocation2 + $0x1d8] sm:$0xff] }
  0x4b   :  { %416 = vmatprep.subr.mxu0 %v343_v51  ;;  %282 = vmatpush1.msra.mxu1 %v207_v52  ;;  %v392_v18 = vld [vmem:[#allocation4 + $0x1e0] sm:$0xff]  ;;  %v391_v20 = vld [vmem:[#allocation4 + $0x1d8] sm:$0xff]  ;;  %v255_v21 = vld [vmem:[#allocation2 + $0x1d0] sm:$0xff] }
  0x4c   :  { %417 = vmatpush1.msra.mxu0 %v342_v53  ;;  %283 = vmatprep.subr.mxu1 %v206_v54  ;;  %v390_v22 = vld [vmem:[#allocation4 + $0x1d0] sm:$0xff]  ;;  %v254_v23 = vld [vmem:[#allocation2 + $0x1c8] sm:$0xff]  ;;  %v253_v25 = vld [vmem:[#allocation2 + $0x1c0] sm:$0xff] }
  0x4d   :  { %418 = vmatprep.subr.mxu0 %v341_v55  ;;  %284 = vmatpush1.msra.mxu1 %v205_v56  ;;  %v389_v24 = vld [vmem:[#allocation4 + $0x1c8] sm:$0xff]  ;;  %v388_v26 = vld [vmem:[#allocation4 + $0x1c0] sm:$0xff]  ;;  %v252_v27 = vld [vmem:[#allocation2 + $0x1b8] sm:$0xff] }
  0x4e   :  { %419 = vmatpush1.msra.mxu0 %v340_v57  ;;  %285 = vmatprep.subr.mxu1 %v204_v58  ;;  %v387_v28 = vld [vmem:[#allocation4 + $0x1b8] sm:$0xff]  ;;  %v251_v29 = vld [vmem:[#allocation2 + $0x1b0] sm:$0xff]  ;;  %v250_v31 = vld [vmem:[#allocation2 + $0x1a8] sm:$0xff] }
  0x4f   :  { %420 = vmatprep.subr.mxu0 %v339_v59  ;;  %286 = vmatpush1.msra.mxu1 %v203_v60  ;;  %v386_v30 = vld [vmem:[#allocation4 + $0x1b0] sm:$0xff]  ;;  %v385_v32 = vld [vmem:[#allocation4 + $0x1a8] sm:$0xff]  ;;  %v249_v33 = vld [vmem:[#allocation2 + $0x1a0] sm:$0xff] }
  0x50   :  { %421 = vmatpush1.msra.mxu0 %v338_v61  ;;  %287 = vmatprep.subr.mxu1 %v202_v62  ;;  %v384_v34 = vld [vmem:[#allocation4 + $0x1a0] sm:$0xff]  ;;  %v248_v35 = vld [vmem:[#allocation2 + $0x198] sm:$0xff]  ;;  %v247_v37 = vld [vmem:[#allocation2 + $0x190] sm:$0xff] }
  0x51   :  { %422 = vmatprep.subr.mxu0 %v337_v63  ;;  %288 = vmatpush1.msra.mxu1 %v201_v1  ;;  %v383_v36 = vld [vmem:[#allocation4 + $0x198] sm:$0xff]  ;;  %v382_v38 = vld [vmem:[#allocation4 + $0x190] sm:$0xff]  ;;  %v246_v39 = vld [vmem:[#allocation2 + $0x188] sm:$0xff] }
  0x52   :  { %423 = vmatpush1.msra.mxu0 %v336_v2  ;;  %289 = vmatprep.subr.mxu1 %v200_v3  ;;  %v381_v40 = vld [vmem:[#allocation4 + $0x188] sm:$0xff]  ;;  %v245_v41 = vld [vmem:[#allocation2 + $0x180] sm:$0xff]  ;;  %v244_v43 = vld [vmem:[#allocation2 + $0x178] sm:$0xff] }
  0x53   :  { %424 = vmatprep.subr.mxu0 %v335_v4  ;;  %290 = vmatpush1.msra.mxu1 %v199_v5  ;;  %v380_v42 = vld [vmem:[#allocation4 + $0x180] sm:$0xff]  ;;  %v379_v44 = vld [vmem:[#allocation4 + $0x178] sm:$0xff]  ;;  %v243_v45 = vld [vmem:[#allocation2 + $0x170] sm:$0xff] }
  0x54   :  { %425 = vmatpush1.msra.mxu0 %v334_v6  ;;  %291 = vmatprep.subr.mxu1 %v198_v7  ;;  %v378_v46 = vld [vmem:[#allocation4 + $0x170] sm:$0xff]  ;;  %v242_v47 = vld [vmem:[#allocation2 + $0x168] sm:$0xff]  ;;  %v241_v49 = vld [vmem:[#allocation2 + $0x160] sm:$0xff] }
  0x55   :  { %426 = vmatprep.subr.mxu0 %v333_v8  ;;  %292 = vmatpush1.msra.mxu1 %v197_v9  ;;  %v377_v48 = vld [vmem:[#allocation4 + $0x168] sm:$0xff]  ;;  %v376_v50 = vld [vmem:[#allocation4 + $0x160] sm:$0xff]  ;;  %v240_v51 = vld [vmem:[#allocation2 + $0x158] sm:$0xff] }
  0x56   :  { %427 = vmatpush1.msra.mxu0 %v332_v10  ;;  %293 = vmatprep.subr.mxu1 %v260_v11  ;;  %v375_v52 = vld [vmem:[#allocation4 + $0x158] sm:$0xff]  ;;  %v239_v53 = vld [vmem:[#allocation2 + $0x150] sm:$0xff]  ;;  %v238_v55 = vld [vmem:[#allocation2 + $0x148] sm:$0xff] }
  0x57   :  { %428 = vmatprep.subr.mxu0 %v395_v12  ;;  %294 = vmatpush2.msra.mxu1 %v259_v13  ;;  %v374_v54 = vld [vmem:[#allocation4 + $0x150] sm:$0xff]  ;;  %v373_v56 = vld [vmem:[#allocation4 + $0x148] sm:$0xff]  ;;  %v237_v57 = vld [vmem:[#allocation2 + $0x140] sm:$0xff] }
  0x58   :  { %429 = vmatpush2.msra.mxu0 %v394_v14  ;;  %295 = vmatprep.subr.mxu1 %v258_v15  ;;  %v372_v58 = vld [vmem:[#allocation4 + $0x140] sm:$0xff]  ;;  %v236_v59 = vld [vmem:[#allocation2 + $0x138] sm:$0xff]  ;;  %v235_v61 = vld [vmem:[#allocation2 + $0x130] sm:$0xff] }
  0x59   :  { %430 = vmatprep.subr.mxu0 %v393_v16  ;;  %296 = vmatpush2.msra.mxu1 %v257_v17  ;;  %v371_v60 = vld [vmem:[#allocation4 + $0x138] sm:$0xff]  ;;  %v370_v62 = vld [vmem:[#allocation4 + $0x130] sm:$0xff]  ;;  %v234_v63 = vld [vmem:[#allocation2 + $0x128] sm:$0xff] }
  0x5a   :  { %431 = vmatpush2.msra.mxu0 %v392_v18  ;;  %297 = vmatprep.subr.mxu1 %v256_v19  ;;  %v369_v1 = vld [vmem:[#allocation4 + $0x128] sm:$0xff]  ;;  %v233_v2 = vld [vmem:[#allocation2 + $0x120] sm:$0xff]  ;;  %v232_v4 = vld [vmem:[#allocation2 + $0x118] sm:$0xff] }
  0x5b   :  { %432 = vmatprep.subr.mxu0 %v391_v20  ;;  %298 = vmatpush2.msra.mxu1 %v255_v21  ;;  %v368_v3 = vld [vmem:[#allocation4 + $0x120] sm:$0xff]  ;;  %v367_v5 = vld [vmem:[#allocation4 + $0x118] sm:$0xff]  ;;  %v231_v6 = vld [vmem:[#allocation2 + $0x110] sm:$0xff] }
  0x5c   :  { %433 = vmatpush2.msra.mxu0 %v390_v22  ;;  %299 = vmatprep.subr.mxu1 %v254_v23  ;;  %v366_v7 = vld [vmem:[#allocation4 + $0x110] sm:$0xff]  ;;  %v230_v8 = vld [vmem:[#allocation2 + $0x108] sm:$0xff]  ;;  %v229_v10 = vld [vmem:[#allocation2 + $0x100] sm:$0xff] }
  0x5d   :  { %434 = vmatprep.subr.mxu0 %v389_v24  ;;  %300 = vmatpush2.msra.mxu1 %v253_v25  ;;  %v365_v9 = vld [vmem:[#allocation4 + $0x108] sm:$0xff]  ;;  %v364_v11 = vld [vmem:[#allocation4 + $0x100] sm:$0xff] }
  0x5e   :  { %435 = vmatpush2.msra.mxu0 %v388_v26  ;;  %301 = vmatprep.subr.mxu1 %v252_v27  ;;  %v782_v21 = vld [vmem:[%s1484_s10] sm:$0xff] }
  0x5f   :  { %436 = vmatprep.subr.mxu0 %v387_v28  ;;  %302 = vmatpush2.msra.mxu1 %v251_v29  ;;  %v1070_v22 = vld [vmem:[%s1488_s14] sm:$0xff] }
  0x60   :  { %437 = vmatpush2.msra.mxu0 %v386_v30  ;;  %303 = vmatprep.subr.mxu1 %v250_v31  ;;  %v468_v27 = vld [vmem:[%s1480_s6] sm:$0xff]  ;;  %v827_v31 = vld [vmem:[#allocation6 + $0xf8] sm:$0xff] }
  0x61   :  { %438 = vmatprep.subr.mxu0 %v385_v32  ;;  %304 = vmatpush2.msra.mxu1 %v249_v33  ;;  %v467_v28 = vld [vmem:[%s1479_s5] sm:$0xff]  ;;  %v891_v32 = vld [vmem:[#allocation7 + $0xf8] sm:$0xff]  ;;  %v826_v33 = vld [vmem:[#allocation6 + $0xf0] sm:$0xff] }
  0x62   :  { %439 = vmatpush2.msra.mxu0 %v384_v34  ;;  %305 = vmatprep.subr.mxu1 %v248_v35  ;;  %v633_v29 = vld [vmem:[%s1482_s8] sm:$0xff]  ;;  %v890_v34 = vld [vmem:[#allocation7 + $0xf0] sm:$0xff]  ;;  %v825_v35 = vld [vmem:[#allocation6 + $0xe8] sm:$0xff] }
  0x63   :  { %440 = vmatprep.subr.mxu0 %v383_v36  ;;  %306 = vmatpush2.msra.mxu1 %v247_v37  ;;  %v632_v30 = vld [vmem:[%s1481_s7] sm:$0xff]  ;;  %v889_v36 = vld [vmem:[#allocation7 + $0xe8] sm:$0xff] }
  0x64   :  { %441 = vmatpush2.msra.mxu0 %v382_v38  ;;  %307 = vmatprep.subr.mxu1 %v246_v39  ;;  %v824_v37 = vld [vmem:[#allocation6 + $0xe0] sm:$0xff]  ;;  %v823_v39 = vld [vmem:[#allocation6 + $0xd8] sm:$0xff] }
  0x65   :  { %442 = vmatprep.subr.mxu0 %v381_v40  ;;  %308 = vmatpush2.msra.mxu1 %v245_v41  ;;  %v888_v38 = vld [vmem:[#allocation7 + $0xe0] sm:$0xff]  ;;  %v887_v40 = vld [vmem:[#allocation7 + $0xd8] sm:$0xff]  ;;  %v822_v41 = vld [vmem:[#allocation6 + $0xd0] sm:$0xff] }
  0x66   :  { %443 = vmatpush2.msra.mxu0 %v380_v42  ;;  %309 = vmatprep.subr.mxu1 %v244_v43  ;;  %v886_v42 = vld [vmem:[#allocation7 + $0xd0] sm:$0xff]  ;;  %v821_v43 = vld [vmem:[#allocation6 + $0xc8] sm:$0xff] }
  0x67   :  { %444 = vmatprep.subr.mxu0 %v379_v44  ;;  %310 = vmatpush2.msra.mxu1 %v243_v45  ;;  %v885_v44 = vld [vmem:[#allocation7 + $0xc8] sm:$0xff]  ;;  %v820_v45 = vld [vmem:[#allocation6 + $0xc0] sm:$0xff] }
  0x68   :  { %445 = vmatpush2.msra.mxu0 %v378_v46  ;;  %311 = vmatprep.subr.mxu1 %v242_v47  ;;  %v884_v46 = vld [vmem:[#allocation7 + $0xc0] sm:$0xff]  ;;  %v819_v47 = vld [vmem:[#allocation6 + $0xb8] sm:$0xff] }
  0x69   :  { %446 = vmatprep.subr.mxu0 %v377_v48  ;;  %312 = vmatpush2.msra.mxu1 %v241_v49  ;;  %v883_v48 = vld [vmem:[#allocation7 + $0xb8] sm:$0xff]  ;;  %v818_v49 = vld [vmem:[#allocation6 + $0xb0] sm:$0xff] }
  0x6a   :  { %447 = vmatpush2.msra.mxu0 %v376_v50  ;;  %313 = vmatprep.subr.mxu1 %v240_v51  ;;  %v882_v50 = vld [vmem:[#allocation7 + $0xb0] sm:$0xff]  ;;  %v817_v51 = vld [vmem:[#allocation6 + $0xa8] sm:$0xff] }
  0x6b   :  { %448 = vmatprep.subr.mxu0 %v375_v52  ;;  %314 = vmatpush2.msra.mxu1 %v239_v53  ;;  %v881_v52 = vld [vmem:[#allocation7 + $0xa8] sm:$0xff]  ;;  %v816_v53 = vld [vmem:[#allocation6 + $0xa0] sm:$0xff] }
  0x6c   :  { %449 = vmatpush2.msra.mxu0 %v374_v54  ;;  %315 = vmatprep.subr.mxu1 %v238_v55  ;;  %v880_v54 = vld [vmem:[#allocation7 + $0xa0] sm:$0xff]  ;;  %v815_v55 = vld [vmem:[#allocation6 + $0x98] sm:$0xff] }
  0x6d   :  { %450 = vmatprep.subr.mxu0 %v373_v56  ;;  %316 = vmatpush2.msra.mxu1 %v237_v57  ;;  %v879_v56 = vld [vmem:[#allocation7 + $0x98] sm:$0xff]  ;;  %v814_v57 = vld [vmem:[#allocation6 + $0x90] sm:$0xff] }
  0x6e   :  { %451 = vmatpush2.msra.mxu0 %v372_v58  ;;  %317 = vmatprep.subr.mxu1 %v236_v59  ;;  %v878_v58 = vld [vmem:[#allocation7 + $0x90] sm:$0xff]  ;;  %v813_v59 = vld [vmem:[#allocation6 + $0x88] sm:$0xff] }
  0x6f   :  { %452 = vmatprep.subr.mxu0 %v371_v60  ;;  %318 = vmatpush2.msra.mxu1 %v235_v61  ;;  %v877_v60 = vld [vmem:[#allocation7 + $0x88] sm:$0xff]  ;;  %v812_v61 = vld [vmem:[#allocation6 + $0x80] sm:$0xff] }
  0x70   :  { %453 = vmatpush2.msra.mxu0 %v370_v62  ;;  %319 = vmatprep.subr.mxu1 %v234_v63  ;;  %v876_v62 = vld [vmem:[#allocation7 + $0x80] sm:$0xff]  ;;  %v811_v63 = vld [vmem:[#allocation6 + $0x78] sm:$0xff] }
  0x71   :  { %454 = vmatprep.subr.mxu0 %v369_v1  ;;  %320 = vmatpush2.msra.mxu1 %v233_v2  ;;  %v875_v1 = vld [vmem:[#allocation7 + $0x78] sm:$0xff]  ;;  %v810_v2 = vld [vmem:[#allocation6 + $0x70] sm:$0xff] }
  0x72   :  { %455 = vmatpush2.msra.mxu0 %v368_v3  ;;  %321 = vmatprep.subr.mxu1 %v232_v4  ;;  %v874_v3 = vld [vmem:[#allocation7 + $0x70] sm:$0xff]  ;;  %v809_v4 = vld [vmem:[#allocation6 + $0x68] sm:$0xff] }
  0x73   :  { %456 = vmatprep.subr.mxu0 %v367_v5  ;;  %322 = vmatpush2.msra.mxu1 %v231_v6  ;;  %v873_v5 = vld [vmem:[#allocation7 + $0x68] sm:$0xff]  ;;  %v808_v6 = vld [vmem:[#allocation6 + $0x60] sm:$0xff] }
  0x74   :  { %457 = vmatpush2.msra.mxu0 %v366_v7  ;;  %323 = vmatprep.subr.mxu1 %v230_v8  ;;  %v872_v7 = vld [vmem:[#allocation7 + $0x60] sm:$0xff]  ;;  %v807_v8 = vld [vmem:[#allocation6 + $0x58] sm:$0xff] }
  0x75   :  { %458 = vmatprep.subr.mxu0 %v365_v9  ;;  %324 = vmatpush2.msra.mxu1 %v229_v10  ;;  %v871_v9 = vld [vmem:[#allocation7 + $0x58] sm:$0xff]  ;;  %v806_v10 = vld [vmem:[#allocation6 + $0x50] sm:$0xff] }
  0x76   :  { %459 = vmatpush2.msra.mxu0 %v364_v11  ;;  %785 = vperm.xlu1 %1192, %v782_v21   ;;  %v870_v11 = vld [vmem:[#allocation7 + $0x50] sm:$0xff] }
  0x77   :  { %v866_v21 = vld [vmem:[#allocation7 + $0x30] sm:$0xff] }
  0x7a   :  { %1074 = vperm.xlu1 %1192, %v1070_v22   ;;  %v801_v22 = vld [vmem:[#allocation6 + $0x28] sm:$0xff] }
  0xae   :  { %v114_v12 = vpop.permute.xlu0 %113 }
  0xf6   :  { %v186_v13 = vpop.f32.mrf.mxu0 }
  0xf7   :  { %v187_v14 = vadd.f32 %v186_v13, %v114_v12  ;;  %v869_v13 = vld [vmem:[#allocation7 + $0x48] sm:$0xff] }
  0xf8   :  { %v188_v15 = vpop.f32.mrf.mxu0 }
  0xf9   :  { %v189_v16 = vadd.f32 %v188_v15, %v114_v12  ;;  %v193_v17 = vmul.f32 0.2, %v187_v14  ;;  %vm191_vm2 = vcmp.ge.f32.partialorder %v187_v14, 0.0  ;;  %v805_v12 = vld [vmem:[#allocation6 + $0x48] sm:$0xff]  ;;  %v868_v15 = vld [vmem:[#allocation7 + $0x40] sm:$0xff] }
  0xfb   :  { %v194_v18 = vmul.f32 0.2, %v189_v16  ;;  %vm192_vm1 = vcmp.ge.f32.partialorder %v189_v16, 0.0  ;;  %v1420_v20 = vsel %vm191_vm2, %v187_v14, %v193_v17  ;;  %v804_v14 = vld [vmem:[#allocation6 + $0x40] sm:$0xff]  ;;  %v867_v17 = vld [vmem:[#allocation7 + $0x38] sm:$0xff] }
  0xfd   :  { %v1416_v19 = vsel %vm192_vm1, %v189_v16, %v194_v18  ;;  %v803_v16 = vld [vmem:[#allocation6 + $0x38] sm:$0xff]  ;;  %v802_v18 = vld [vmem:[#allocation6 + $0x30] sm:$0xff] }
  0xfe   :  { %325 = vmatprep.mubr.f32.mxu1 %v1416_v19  ;;  %460 = vmatprep.mubr.f32.mxu0 %v1416_v19 }
  0xff   :  { %326 = vmatmul.mubr.f32.vlgmr.msra.gmra.mxu1 %v1420_v20  ;;  %461 = vmatmul.mubr.f32.vlgmr.msra.gmra.mxu0 %v1420_v20 }
 0x100   :  { %537 = vmatprep.mubr.f32.mxu1 %v1285_v0  ;;  %611 = vmatprep.mubr.f32.mxu0 %v1285_v0 }
 0x1bf   :  { %v327_v23 = vpop.f32.mrf.mxu1  ;;  %v462_v24 = vpop.f32.mrf.mxu0 }
 0x1c1   :  { %v329_v25 = vpop.f32.mrf.mxu1  ;;  %v464_v26 = vpop.f32.mrf.mxu0 }
 0x1c2   :  { %503 = vmatprep.subr.mxu1 %v464_v26  ;;  %577 = vmatprep.subr.mxu0 %v329_v25 }
 0x1c3   :  { %504 = vmatpush1.msra.mxu1 %v462_v24  ;;  %578 = vmatpush1.msra.mxu0 %v327_v23 }
 0x1c4   :  { %1177 = vmatmul.mubr.msk.f32.vlgmr.msra.gmra.mxu1 %vm469_vm3, %v468_v27  ;;  %1178 = vmatmul.mubr.msk.f32.vlgmr.msra.gmra.mxu0 %vm469_vm3, %v467_v28  ;;  %v863_v27 = vld [vmem:[#allocation7 + $0x18] sm:$0xff]  ;;  %v798_v28 = vld [vmem:[#allocation6 + $0x10] sm:$0xff] }
 0x1c5   :  { %667 = vmatprep.subr.mxu1 %v464_v26  ;;  %741 = vmatprep.subr.mxu0 %v329_v25  ;;  %v864_v25 = vld [vmem:[#allocation7 + $0x20] sm:$0xff]  ;;  %v799_v26 = vld [vmem:[#allocation6 + $0x18] sm:$0xff] }
 0x1c6   :  { %668 = vmatpush1.msra.mxu1 %v462_v24  ;;  %742 = vmatpush1.msra.mxu0 %v327_v23  ;;  %v865_v23 = vld [vmem:[#allocation7 + $0x28] sm:$0xff]  ;;  %v800_v24 = vld [vmem:[#allocation6 + $0x20] sm:$0xff] }
 0x1c7   :  { %701 = vmatprep.mubr.f32.mxu1 %v1285_v0  ;;  %775 = vmatprep.mubr.f32.mxu0 %v1285_v0 }
 0x1c8   :  { %1179 = vmatmul.mubr.msk.f32.vlgmr.msra.gmra.mxu1 %vm469_vm3, %v633_v29  ;;  %1180 = vmatmul.mubr.msk.f32.vlgmr.msra.gmra.mxu0 %vm469_vm3, %v632_v30  ;;  %v862_v29 = vld [vmem:[#allocation7 + $0x10] sm:$0xff]  ;;  %v797_v30 = vld [vmem:[#allocation6 + $0x8] sm:$0xff] }
 0x1c9   :  { %995 = vmatprep.subr.mxu0 %v827_v31  ;;  %924 = vmatprep.subr.mxu1 %v891_v32  ;;  %v861_v31 = vld [vmem:[#allocation7 + $0x8] sm:$0xff]  ;;  %v796_v32 = vld [vmem:[#allocation6] sm:$0xff] }
 0x1ca   :  { %996 = vmatpush1.msra.mxu0 %v826_v33  ;;  %925 = vmatpush1.msra.mxu1 %v890_v34  ;;  %v860_v33 = vld [vmem:[#allocation7] sm:$0xff]  ;;  %v859_v34 = vld [vmem:[#allocation6 + $0x1f8] sm:$0xff] }
 0x1cb   :  { %997 = vmatprep.subr.mxu0 %v825_v35  ;;  %926 = vmatprep.subr.mxu1 %v889_v36  ;;  %v923_v35 = vld [vmem:[#allocation7 + $0x1f8] sm:$0xff]  ;;  %v858_v36 = vld [vmem:[#allocation6 + $0x1f0] sm:$0xff] }
 0x1cc   :  { %998 = vmatpush1.msra.mxu0 %v824_v37  ;;  %927 = vmatpush1.msra.mxu1 %v888_v38  ;;  %v922_v37 = vld [vmem:[#allocation7 + $0x1f0] sm:$0xff]  ;;  %v857_v38 = vld [vmem:[#allocation6 + $0x1e8] sm:$0xff] }
 0x1cd   :  { %999 = vmatprep.subr.mxu0 %v823_v39  ;;  %928 = vmatprep.subr.mxu1 %v887_v40  ;;  %v921_v39 = vld [vmem:[#allocation7 + $0x1e8] sm:$0xff]  ;;  %v856_v40 = vld [vmem:[#allocation6 + $0x1e0] sm:$0xff] }
 0x1ce   :  { %1000 = vmatpush1.msra.mxu0 %v822_v41  ;;  %929 = vmatpush1.msra.mxu1 %v886_v42  ;;  %v920_v41 = vld [vmem:[#allocation7 + $0x1e0] sm:$0xff]  ;;  %v855_v42 = vld [vmem:[#allocation6 + $0x1d8] sm:$0xff] }
 0x1cf   :  { %1001 = vmatprep.subr.mxu0 %v821_v43  ;;  %930 = vmatprep.subr.mxu1 %v885_v44  ;;  %v919_v43 = vld [vmem:[#allocation7 + $0x1d8] sm:$0xff]  ;;  %v854_v44 = vld [vmem:[#allocation6 + $0x1d0] sm:$0xff] }
 0x1d0   :  { %1002 = vmatpush1.msra.mxu0 %v820_v45  ;;  %931 = vmatpush1.msra.mxu1 %v884_v46  ;;  %v918_v45 = vld [vmem:[#allocation7 + $0x1d0] sm:$0xff]  ;;  %v853_v46 = vld [vmem:[#allocation6 + $0x1c8] sm:$0xff] }
 0x1d1   :  { %1003 = vmatprep.subr.mxu0 %v819_v47  ;;  %932 = vmatprep.subr.mxu1 %v883_v48  ;;  %v917_v47 = vld [vmem:[#allocation7 + $0x1c8] sm:$0xff]  ;;  %v852_v48 = vld [vmem:[#allocation6 + $0x1c0] sm:$0xff] }
 0x1d2   :  { %1004 = vmatpush1.msra.mxu0 %v818_v49  ;;  %933 = vmatpush1.msra.mxu1 %v882_v50  ;;  %v916_v49 = vld [vmem:[#allocation7 + $0x1c0] sm:$0xff]  ;;  %v851_v50 = vld [vmem:[#allocation6 + $0x1b8] sm:$0xff] }
 0x1d3   :  { %1005 = vmatprep.subr.mxu0 %v817_v51  ;;  %934 = vmatprep.subr.mxu1 %v881_v52  ;;  %v915_v51 = vld [vmem:[#allocation7 + $0x1b8] sm:$0xff]  ;;  %v850_v52 = vld [vmem:[#allocation6 + $0x1b0] sm:$0xff] }
 0x1d4   :  { %1006 = vmatpush1.msra.mxu0 %v816_v53  ;;  %935 = vmatpush1.msra.mxu1 %v880_v54  ;;  %v914_v53 = vld [vmem:[#allocation7 + $0x1b0] sm:$0xff]  ;;  %v849_v54 = vld [vmem:[#allocation6 + $0x1a8] sm:$0xff] }
 0x1d5   :  { %1007 = vmatprep.subr.mxu0 %v815_v55  ;;  %936 = vmatprep.subr.mxu1 %v879_v56  ;;  %v913_v55 = vld [vmem:[#allocation7 + $0x1a8] sm:$0xff]  ;;  %v848_v56 = vld [vmem:[#allocation6 + $0x1a0] sm:$0xff] }
 0x1d6   :  { %1008 = vmatpush1.msra.mxu0 %v814_v57  ;;  %937 = vmatpush1.msra.mxu1 %v878_v58  ;;  %v912_v57 = vld [vmem:[#allocation7 + $0x1a0] sm:$0xff]  ;;  %v847_v58 = vld [vmem:[#allocation6 + $0x198] sm:$0xff] }
 0x1d7   :  { %1009 = vmatprep.subr.mxu0 %v813_v59  ;;  %938 = vmatprep.subr.mxu1 %v877_v60  ;;  %v911_v59 = vld [vmem:[#allocation7 + $0x198] sm:$0xff]  ;;  %v846_v60 = vld [vmem:[#allocation6 + $0x190] sm:$0xff] }
 0x1d8   :  { %1010 = vmatpush1.msra.mxu0 %v812_v61  ;;  %939 = vmatpush1.msra.mxu1 %v876_v62  ;;  %v910_v61 = vld [vmem:[#allocation7 + $0x190] sm:$0xff]  ;;  %v845_v62 = vld [vmem:[#allocation6 + $0x188] sm:$0xff] }
 0x1d9   :  { %1011 = vmatprep.subr.mxu0 %v811_v63  ;;  %940 = vmatprep.subr.mxu1 %v875_v1  ;;  %v909_v63 = vld [vmem:[#allocation7 + $0x188] sm:$0xff]  ;;  %v844_v1 = vld [vmem:[#allocation6 + $0x180] sm:$0xff] }
 0x1da   :  { %1012 = vmatpush1.msra.mxu0 %v810_v2  ;;  %941 = vmatpush1.msra.mxu1 %v874_v3  ;;  %v908_v2 = vld [vmem:[#allocation7 + $0x180] sm:$0xff]  ;;  %v843_v3 = vld [vmem:[#allocation6 + $0x178] sm:$0xff] }
 0x1db   :  { %1013 = vmatprep.subr.mxu0 %v809_v4  ;;  %942 = vmatprep.subr.mxu1 %v873_v5  ;;  %v907_v4 = vld [vmem:[#allocation7 + $0x178] sm:$0xff]  ;;  %v842_v5 = vld [vmem:[#allocation6 + $0x170] sm:$0xff] }
 0x1dc   :  { %1014 = vmatpush1.msra.mxu0 %v808_v6  ;;  %943 = vmatpush1.msra.mxu1 %v872_v7  ;;  %v841_v6 = vld [vmem:[#allocation6 + $0x168] sm:$0xff]  ;;  %v840_v7 = vld [vmem:[#allocation6 + $0x160] sm:$0xff] }
 0x1dd   :  { %1015 = vmatprep.subr.mxu0 %v807_v8  ;;  %944 = vmatprep.subr.mxu1 %v871_v9  ;;  %v839_v8 = vld [vmem:[#allocation6 + $0x158] sm:$0xff]  ;;  %v906_v9 = vld [vmem:[#allocation7 + $0x170] sm:$0xff] }
 0x1de   :  { %1016 = vmatpush1.msra.mxu0 %v806_v10  ;;  %945 = vmatpush1.msra.mxu1 %v870_v11  ;;  %v838_v10 = vld [vmem:[#allocation6 + $0x150] sm:$0xff]  ;;  %v905_v11 = vld [vmem:[#allocation7 + $0x168] sm:$0xff] }
 0x1df   :  { %1017 = vmatprep.subr.mxu0 %v805_v12  ;;  %946 = vmatprep.subr.mxu1 %v869_v13  ;;  %v837_v12 = vld [vmem:[#allocation6 + $0x148] sm:$0xff]  ;;  %v904_v13 = vld [vmem:[#allocation7 + $0x160] sm:$0xff] }
 0x1e0   :  { %1018 = vmatpush1.msra.mxu0 %v804_v14  ;;  %947 = vmatpush1.msra.mxu1 %v868_v15  ;;  %v836_v14 = vld [vmem:[#allocation6 + $0x140] sm:$0xff]  ;;  %v903_v15 = vld [vmem:[#allocation7 + $0x158] sm:$0xff] }
 0x1e1   :  { %1019 = vmatprep.subr.mxu0 %v803_v16  ;;  %948 = vmatprep.subr.mxu1 %v867_v17  ;;  %v835_v16 = vld [vmem:[#allocation6 + $0x138] sm:$0xff]  ;;  %v902_v17 = vld [vmem:[#allocation7 + $0x150] sm:$0xff] }
 0x1e2   :  { %1020 = vmatpush1.msra.mxu0 %v802_v18  ;;  %949 = vmatpush1.msra.mxu1 %v866_v21  ;;  %v834_v18 = vld [vmem:[#allocation6 + $0x130] sm:$0xff]  ;;  %v901_v21 = vld [vmem:[#allocation7 + $0x148] sm:$0xff] }
 0x1e3   :  { %1021 = vmatprep.subr.mxu0 %v801_v22  ;;  %950 = vmatprep.subr.mxu1 %v865_v23  ;;  %v833_v22 = vld [vmem:[#allocation6 + $0x128] sm:$0xff]  ;;  %v900_v23 = vld [vmem:[#allocation7 + $0x140] sm:$0xff] }
 0x1e4   :  { %1022 = vmatpush1.msra.mxu0 %v800_v24  ;;  %951 = vmatpush1.msra.mxu1 %v864_v25  ;;  %v832_v24 = vld [vmem:[#allocation6 + $0x120] sm:$0xff]  ;;  %v899_v25 = vld [vmem:[#allocation7 + $0x138] sm:$0xff] }
 0x1e5   :  { %1023 = vmatprep.subr.mxu0 %v799_v26  ;;  %952 = vmatprep.subr.mxu1 %v863_v27  ;;  %v831_v26 = vld [vmem:[#allocation6 + $0x118] sm:$0xff]  ;;  %v898_v27 = vld [vmem:[#allocation7 + $0x130] sm:$0xff] }
 0x1e6   :  { %1024 = vmatpush1.msra.mxu0 %v798_v28  ;;  %953 = vmatpush1.msra.mxu1 %v862_v29  ;;  %v830_v28 = vld [vmem:[#allocation6 + $0x110] sm:$0xff]  ;;  %v897_v29 = vld [vmem:[#allocation7 + $0x128] sm:$0xff] }
 0x1e7   :  { %1025 = vmatprep.subr.mxu0 %v797_v30  ;;  %954 = vmatprep.subr.mxu1 %v861_v31  ;;  %v829_v30 = vld [vmem:[#allocation6 + $0x108] sm:$0xff]  ;;  %v896_v31 = vld [vmem:[#allocation7 + $0x120] sm:$0xff] }
 0x1e8   :  { %1026 = vmatpush1.msra.mxu0 %v796_v32  ;;  %955 = vmatpush1.msra.mxu1 %v860_v33  ;;  %v828_v32 = vld [vmem:[#allocation6 + $0x100] sm:$0xff]  ;;  %v895_v33 = vld [vmem:[#allocation7 + $0x118] sm:$0xff] }
 0x1e9   :  { %1027 = vmatprep.subr.mxu0 %v859_v34  ;;  %956 = vmatprep.subr.mxu1 %v923_v35  ;;  %v894_v34 = vld [vmem:[#allocation7 + $0x110] sm:$0xff]  ;;  %v893_v35 = vld [vmem:[#allocation7 + $0x108] sm:$0xff] }
 0x1ea   :  { %1028 = vmatpush2.msra.mxu0 %v858_v36  ;;  %957 = vmatpush2.msra.mxu1 %v922_v37  ;;  %v892_v36 = vld [vmem:[#allocation7 + $0x100] sm:$0xff] }
 0x1eb   :  { %1029 = vmatprep.subr.mxu0 %v857_v38  ;;  %958 = vmatprep.subr.mxu1 %v921_v39  ;;  %v622_v39 = vpop.permute.xlu0 %621 }
 0x1ec   :  { %1030 = vmatpush2.msra.mxu0 %v856_v40  ;;  %959 = vmatpush2.msra.mxu1 %v920_v41 }
 0x1ed   :  { %1031 = vmatprep.subr.mxu0 %v855_v42  ;;  %960 = vmatprep.subr.mxu1 %v919_v43 }
 0x1ee   :  { %1032 = vmatpush2.msra.mxu0 %v854_v44  ;;  %961 = vmatpush2.msra.mxu1 %v918_v45 }
 0x1ef   :  { %1033 = vmatprep.subr.mxu0 %v853_v46  ;;  %962 = vmatprep.subr.mxu1 %v917_v47 }
 0x1f0   :  { %1034 = vmatpush2.msra.mxu0 %v852_v48  ;;  %963 = vmatpush2.msra.mxu1 %v916_v49  ;;  %v786_v48 = vpop.permute.xlu1 %785 }
 0x1f1   :  { %1035 = vmatprep.subr.mxu0 %v851_v50  ;;  %964 = vmatprep.subr.mxu1 %v915_v51 }
 0x1f2   :  { %1036 = vmatpush2.msra.mxu0 %v850_v52  ;;  %965 = vmatpush2.msra.mxu1 %v914_v53 }
 0x1f3   :  { %1037 = vmatprep.subr.mxu0 %v849_v54  ;;  %966 = vmatprep.subr.mxu1 %v913_v55 }
 0x1f4   :  { %1038 = vmatpush2.msra.mxu0 %v848_v56  ;;  %967 = vmatpush2.msra.mxu1 %v912_v57 }
 0x1f5   :  { %1039 = vmatprep.subr.mxu0 %v847_v58  ;;  %968 = vmatprep.subr.mxu1 %v911_v59 }
 0x1f6   :  { %1040 = vmatpush2.msra.mxu0 %v846_v60  ;;  %969 = vmatpush2.msra.mxu1 %v910_v61 }
 0x1f7   :  { %1041 = vmatprep.subr.mxu0 %v845_v62  ;;  %970 = vmatprep.subr.mxu1 %v909_v63 }
 0x1f8   :  { %1042 = vmatpush2.msra.mxu0 %v844_v1  ;;  %971 = vmatpush2.msra.mxu1 %v908_v2 }
 0x1f9   :  { %1043 = vmatprep.subr.mxu0 %v843_v3  ;;  %972 = vmatprep.subr.mxu1 %v907_v4 }
 0x1fa   :  { %1044 = vmatpush2.msra.mxu0 %v842_v5  ;;  %973 = vmatpush2.msra.mxu1 %v906_v9  ;;  %v1067_v9 = vld [vmem:[%s1487_s13 + $0x8] sm:$0xff] }
 0x1fb   :  { %1045 = vmatprep.subr.mxu0 %v841_v6  ;;  %974 = vmatprep.subr.mxu1 %v905_v11 }
 0x1fc   :  { %1046 = vmatpush2.msra.mxu0 %v840_v7  ;;  %975 = vmatpush2.msra.mxu1 %v904_v13  ;;  %v1080_v13 = vpop.permute.xlu0 %1079 }
 0x1fd   :  { %1047 = vmatprep.subr.mxu0 %v839_v8  ;;  %976 = vmatprep.subr.mxu1 %v903_v15  ;;  %v1066_v8 = vld [vmem:[%s1487_s13] sm:$0xff] }
 0x1fe   :  { %1048 = vmatpush2.msra.mxu0 %v838_v10  ;;  %977 = vmatpush2.msra.mxu1 %v902_v17  ;;  %v1075_v10 = vpop.permute.xlu1 %1074 }
 0x1ff   :  { %1049 = vmatprep.subr.mxu0 %v837_v12  ;;  %978 = vmatprep.subr.mxu1 %v901_v21 }
 0x200   :  { %1050 = vmatpush2.msra.mxu0 %v836_v14  ;;  %979 = vmatpush2.msra.mxu1 %v900_v23 }
 0x201   :  { %1051 = vmatprep.subr.mxu0 %v835_v16  ;;  %980 = vmatprep.subr.mxu1 %v899_v25 }
 0x202   :  { %1052 = vmatpush2.msra.mxu0 %v834_v18  ;;  %981 = vmatpush2.msra.mxu1 %v898_v27 }
 0x203   :  { %1053 = vmatprep.subr.mxu0 %v833_v22  ;;  %982 = vmatprep.subr.mxu1 %v897_v29 }
 0x204   :  { %1054 = vmatpush2.msra.mxu0 %v832_v24  ;;  %983 = vmatpush2.msra.mxu1 %v896_v31 }
 0x205   :  { %1055 = vmatprep.subr.mxu0 %v831_v26  ;;  %984 = vmatprep.subr.mxu1 %v895_v33 }
 0x206   :  { %1056 = vmatpush2.msra.mxu0 %v830_v28  ;;  %985 = vmatpush2.msra.mxu1 %v894_v34 }
 0x207   :  { %1057 = vmatprep.subr.mxu0 %v829_v30  ;;  %986 = vmatprep.subr.mxu1 %v893_v35 }
 0x208   :  { %1058 = vmatpush2.msra.mxu0 %v828_v32  ;;  %987 = vmatpush2.msra.mxu1 %v892_v36 }
 0x284   :  { %v539_v37 = vpop.f32.mrf.mxu1  ;;  %v613_v38 = vpop.f32.mrf.mxu0 }
 0x285   :  { %v614_v40 = vadd.f32 %v613_v38, %v539_v37 }
 0x286   :  { %v541_v41 = vpop.f32.mrf.mxu1  ;;  %v615_v42 = vpop.f32.mrf.mxu0 }
 0x287   :  { %v624_v43 = vadd.f32 %v622_v39, %v614_v40  ;;  %v616_v44 = vadd.f32 %v615_v42, %v541_v41 }
 0x288   :  { %v703_v45 = vpop.f32.mrf.mxu1  ;;  %v777_v46 = vpop.f32.mrf.mxu0 }
 0x289   :  { %v625_v47 = vadd.f32 %v622_v39, %v616_v44  ;;  %v778_v49 = vadd.f32 %v777_v46, %v703_v45  ;;  %v628_v50 = vmul.f32 0.2, %v624_v43  ;;  %vm626_vm4 = vcmp.ge.f32.partialorder %v624_v43, 0.0 }
 0x28a   :  { %v705_v51 = vpop.f32.mrf.mxu1  ;;  %v779_v52 = vpop.f32.mrf.mxu0 }
 0x28b   :  { %v788_v53 = vadd.f32 %v786_v48, %v778_v49  ;;  %v780_v54 = vadd.f32 %v779_v52, %v705_v51  ;;  %vm627_vm5 = vcmp.ge.f32.partialorder %v625_v47, 0.0  ;;  %v629_v55 = vmul.f32 0.2, %v625_v47 }
 0x28c   :  { %v630_v59 = vsel %vm626_vm4, %v624_v43, %v628_v50 }
 0x28d   :  { %v789_v56 = vadd.f32 %v786_v48, %v780_v54  ;;  %v631_v57 = vsel %vm627_vm5, %v625_v47, %v629_v55  ;;  %v792_v58 = vmul.f32 0.2, %v788_v53  ;;  %vm790_vm7 = vcmp.ge.f32.partialorder %v788_v53, 0.0 }
 0x28e   :  { %1059 = vmatprep.mubr.f32.mxu0 %v631_v57 }
 0x28f   :  { %1060 = vmatmul.mubr.f32.vlgmr.msra.gmra.mxu0 %v630_v59  ;;  %vm791_vm6 = vcmp.ge.f32.partialorder %v789_v56, 0.0  ;;  %v793_v60 = vmul.f32 0.2, %v789_v56  ;;  %v794_v62 = vsel %vm790_vm7, %v788_v53, %v792_v58 }
 0x291   :  { %v795_v61 = vsel %vm791_vm6, %v789_v56, %v793_v60 }
 0x292   :  { %988 = vmatprep.mubr.f32.mxu1 %v795_v61 }
 0x293   :  { %989 = vmatmul.mubr.f32.vlgmr.msra.gmra.mxu1 %v794_v62 }
 0x294   :  { %1152 = vmatprep.mubr.f32.mxu1 %v1285_v0 }
 0x34f   :  { %v1061_v63 = vpop.f32.mrf.mxu0 }
 0x351   :  { %v1063_v2 = vpop.f32.mrf.mxu0 }
 0x353   :  { %v990_v1 = vpop.f32.mrf.mxu1 }
 0x354   :  { %v1062_v3 = vadd.f32 %v1061_v63, %v990_v1 }
 0x355   :  { %v992_v4 = vpop.f32.mrf.mxu1 }
 0x356   :  { %v1064_v5 = vadd.f32 %v1063_v2, %v992_v4  ;;  %v1068_v7 = vadd.f32 %v1062_v3, %v1420_v20 }
 0x358   :  { %v1069_v6 = vadd.f32 %v1064_v5, %v1416_v19 }
 0x35a   :  { %1118 = vmatprep.subr.mxu1 %v1069_v6 }
 0x35b   :  { %1119 = vmatpush1.msra.mxu1 %v1068_v7 }
 0x35c   :  { %1181 = vmatmul.mubr.msk.f32.vlgmr.msra.gmra.mxu1 %vm469_vm3, %v1066_v8 }
 0x35d   :  { %1158 = vmatprep.mubr.f32.mxu1 %v1285_v0 }
 0x360   :  { %1182 = vmatmul.mubr.msk.f32.gmra.mxu1 %vm469_vm3, %v1067_v9 }
 0x41c   :  { %v1154_v19 = vpop.f32.mrf.mxu1 }
 0x41d   :  { %v1155_v11 = vadd.f32 %v1154_v19, %v1075_v10 }
 0x41e   :  { %v1156_v20 = vpop.f32.mrf.mxu1 }
 0x41f   :  { %1165 = vst [vmem:[%s1489_s15] sm:$0xff] %v1155_v11  ;;  %v1157_v12 = vadd.f32 %v1156_v20, %v1075_v10 }
 0x420   :  { %v1160_v14 = vpop.f32.mrf.mxu1 }
 0x421   :  { %1166 = vst [vmem:[%s1489_s15 + $0x8] sm:$0xff] %v1157_v12  ;;  %v1161_v0 = vadd.f32 %v1160_v14, %v1080_v13 }
 0x422   :  { %v1162_v15 = vpop.f32.mrf.mxu1 }
 0x423   :  { %1167 = vst [vmem:[%s1489_s15 + $0x10] sm:$0xff] %v1161_v0  ;;  %v1163_v16 = vadd.f32 %v1162_v15, %v1080_v13 }
 0x425   :  { %1168 = vst [vmem:[%s1489_s15 + $0x18] sm:$0xff] %v1163_v16 }
 0x426   :  { %1173 = vsyncpa [#allocation3], 1 }
 0x427   :  { %1174 = vsyncpa [#allocation5], 1 }
 0x428   :  { %1175 = vsyncpa [#allocation8], 1 }

</bundles_post_ra>
